<compile_context>
chip_gen: v6e
topology: v6e:2x2x1
jax: 0.10.0
libtpu: 0.0.40
codegen_flags: <defaults>
</compile_context>

<pallas_src>
import math

import numpy as np
import jax
import jax.numpy as jnp
from jax import lax
from jax.experimental import pallas as pl
from jax.experimental.pallas import tpu as pltpu

EPS = 1e-5  # nn.BatchNorm2d default eps


# --------------------------------------------------------------------------- params
def make_params(key, C, F1, D, F2, T1, T2):
    ks = jax.random.split(key, 8)

    def bn_init(k, n):
        k1, k2, k3, k4 = jax.random.split(k, 4)
        gamma = 1.0 + 0.1 * jax.random.normal(k1, (n,), jnp.float32)
        beta = 0.1 * jax.random.normal(k2, (n,), jnp.float32)
        mean = 0.1 * jax.random.normal(k3, (n,), jnp.float32)
        var = 0.5 + jax.random.uniform(k4, (n,), dtype=jnp.float32)
        return (gamma, beta, mean, var)

    return dict(
        w_spec=0.3 * jax.random.normal(ks[0], (F1, 1, 1, T1), jnp.float32),      # Conv2d(1,F1,(1,T1))
        bn1=bn_init(ks[1], F1),
        w_spat=0.5 * jax.random.normal(ks[2], (F1 * D, 1, C, 1), jnp.float32),   # depthwise (C,1), max_norm=1
        bn2=bn_init(ks[3], F1 * D),
        w_temp=0.3 * jax.random.normal(ks[4], (F2, 1, 1, T2), jnp.float32),      # depthwise (1,T2), groups=F2
        b_temp=0.1 * jax.random.normal(ks[5], (F2,), jnp.float32),
        w_point=0.3 * jax.random.normal(ks[6], (F2, F2, 1, 1), jnp.float32),     # 1x1 conv, no bias
        bn3=bn_init(ks[7], F2),
    )


def _renorm_maxnorm1(w):
    """torch.renorm(w, p=2, dim=0, maxnorm=1) — Conv2dWithConstraint."""
    norm = jnp.sqrt(jnp.sum(w ** 2, axis=(1, 2, 3), keepdims=True))
    return w * jnp.where(norm > 1.0, 1.0 / (norm + 1e-7), 1.0)


def _round_up(v, m):
    return -(-v // m) * m


def _pick_block_batch(N, C, F2, target_rows=128):
    """Batch block B: B*C and B*F2 sublane-aligned, B*F2 <= target_rows.

    target_rows=128 keeps the block-diagonal (kron) weights inside a single
    MXU pass on v5e (4x128^2) and well inside one pass on v6e/v7x (2x256^2),
    and bounds the (B*F2)^2 pointwise weight + its VMEM at 128^2.
    """
    def lcm(a, b):
        return a * b // math.gcd(a, b)
    base = lcm(8 // math.gcd(C, 8), 8 // math.gcd(F2, 8))
    cap = max(base, (max(target_rows // F2, 1) // base) * base)
    b = min(cap, _round_up(N, base))
    # keep at least 2 grid steps when affordable (v7x has 2 TensorCores)
    while b > base and -(-N // b) < 2 and (b // 2) % base == 0 and (b // 2) * F2 >= 64:
        b //= 2
    return max(base, b)


# --------------------------------------------------------------------- one-time fold
def eegnet_fold(params, *, num_channels, F1, D, F2, T1, T2, P1, P2,
                batch, time_len, target_rows=128):
    """One-time parameter folding (renorm, BN folds, kron, pool matrices).

    Returns (weights, dims). Called once outside the per-forward path so the
    O((B*F2)^2) kron / tiling glue is never re-run per call.
    """
    assert F2 == F1 * D
    f32, bf16 = jnp.float32, jnp.bfloat16
    C, T, N = num_channels, time_len, batch
    S1, S2 = 4, 8                              # pooling strides hard-coded in the module
    pad1, pad2 = T1 // 2, T2 // 2
    Tp1 = T + 2 * pad1                         # zero-padded time fed to the spectral taps
    Tp1_pad = _round_up(Tp1, 128)              # lane-aligned input rows (trailing zeros unread)
    T_sp = Tp1 - T1 + 1                        # spectral conv output length
    nw1 = (T_sp - P1) // S1 + 1                # AvgPool(1,P1)/4 output length
    W1 = nw1 + 2 * pad2                        # pooled + zero-padded width (temporal conv input)
    W1_pad = _round_up(W1, 128)
    TM = W1 - T2 + 1                           # temporal depthwise conv output length
    Tf = (TM - P2) // S2 + 1                   # AvgPool(1,P2)/8 output length
    Tf_pad = _round_up(Tf, 8)

    B = _pick_block_batch(N, C, F2, target_rows)
    Npad = _round_up(N, B)
    G = Npad // B
    BC, BF2 = B * C, B * F2

    # ---- fold BatchNorms / biases (everything before each ELU is linear) ----
    g1, b1, m1, v1 = params["bn1"]
    g2, b2, m2, v2 = params["bn2"]
    g3, b3, m3, v3 = params["bn3"]
    sc1 = g1 / jnp.sqrt(v1 + EPS); sh1 = b1 - m1 * sc1            # per F1
    sc2 = g2 / jnp.sqrt(v2 + EPS); sh2 = b2 - m2 * sc2            # per F2
    sc3 = g3 / jnp.sqrt(v3 + EPS); sh3 = b3 - m3 * sc3            # per F2
    f1_of_f2 = jnp.arange(F2) // D                                # depthwise group of each f2

    # spatial depthwise conv over electrodes (max_norm=1) -> (F2, C)
    ow = _renorm_maxnorm1(params["w_spat"])[:, 0, :, 0].astype(f32)
    rowsum = jnp.sum(ow, axis=1)

    # spectral taps with BN1*BN2 scales folded; combined BN1/BN2 shift
    w_spec2 = params["w_spec"][:, 0, 0, :].astype(f32)                        # (F1, T1)
    wspec_eff = w_spec2[f1_of_f2] * (sc1[f1_of_f2] * sc2)[:, None]            # (F2, T1)
    shift12 = sh1[f1_of_f2] * rowsum * sc2 + sh2                              # (F2,)

    # temporal depthwise taps; 1x1 conv with BN3 scale folded; combined shift
    wtemp2 = params["w_temp"][:, 0, 0, :].astype(f32)                         # (F2, T2)
    btemp = params["b_temp"].astype(f32)
    wpoint = params["w_point"][:, :, 0, 0].astype(f32)                        # (F2, F2)
    wpoint_s = sc3[:, None] * wpoint
    sh3eff = sc3 * (wpoint @ btemp) + sh3

    # block-diagonal (per-batch) versions for the row-stacked layout; bf16 MXU operands
    eyeB = jnp.eye(B, dtype=f32)
    wspat_bd = jnp.kron(eyeB, ow).astype(bf16)                                # (BF2, BC)
    wpoint_bd = jnp.kron(eyeB, wpoint_s).astype(bf16)                         # (BF2, BF2)
    wspec_col = jnp.tile(wspec_eff, (B, 1)).T[:, :, None]                     # (T1, BF2, 1) f32
    sh12_col = jnp.tile(shift12, (B,))[:, None]                               # (BF2, 1)    f32
    wtemp_col = jnp.tile(wtemp2, (B, 1)).T[:, :, None]                        # (T2, BF2, 1) f32
    sh3_col = jnp.tile(sh3eff, (B,))[:, None]                                 # (BF2, 1)    f32

    # pool-1 (mean, (1,P1), stride 4) as matmul; zero columns bake in the temporal
    # conv's time padding and the lane padding to W1_pad (padded cols never read).
    tt = jnp.arange(T_sp)[:, None]
    jj = jnp.arange(nw1)[None, :]
    core1 = ((tt >= jj * S1) & (tt < jj * S1 + P1)).astype(f32) / P1          # (T_sp, nw1)
    a1 = jnp.concatenate(
        [jnp.zeros((T_sp, pad2), f32), core1,
         jnp.zeros((T_sp, pad2 + (W1_pad - W1)), f32)], axis=1).astype(bf16)  # (T_sp, W1_pad)
    # pool-2 as matmul, pre-transposed + row-padded for the lane-dense transposed output
    tt2 = jnp.arange(TM)[:, None]
    jj2 = jnp.arange(Tf)[None, :]
    a2 = ((tt2 >= jj2 * S2) & (tt2 < jj2 * S2 + P2)).astype(f32) / P2         # (TM, Tf)
    a2_t = jnp.pad(a2.T, ((0, Tf_pad - Tf), (0, 0))).astype(bf16)             # (Tf_pad, TM)

    weights = [wspat_bd, wspec_col, sh12_col, a1, wtemp_col, wpoint_bd, sh3_col, a2_t]
    dims = dict(N=N, C=C, F2=F2, T1=T1, T2=T2, T=T, pad1=pad1,
                B=B, Npad=Npad, G=G, BC=BC, BF2=BF2,
                Tp1=Tp1, Tp1_pad=Tp1_pad, T_sp=T_sp,
                W1=W1, W1_pad=W1_pad, TM=TM, Tf=Tf, Tf_pad=Tf_pad)
    return weights, dims


# ----------------------------------------------------------------------------- Pallas
def eegnet_pallas(x, weights, dims):
    d = dims
    N, C, T, F2 = d["N"], d["C"], d["T"], d["F2"]
    assert x.shape == (N, 1, C, T)
    B, Npad, G = d["B"], d["Npad"], d["G"]
    BC, BF2 = d["BC"], d["BF2"]
    Tp1, Tp1_pad, T_sp = d["Tp1"], d["Tp1_pad"], d["T_sp"]
    W1_pad, TM, Tf, Tf_pad = d["W1_pad"], d["TM"], d["Tf"], d["Tf_pad"]
    T1, T2, pad1 = d["T1"], d["T2"], d["pad1"]
    f32, bf16 = jnp.float32, jnp.bfloat16

    # glue: drop singleton conv channel, zero-pad time (conv padding + lane alignment)
    # and batch, flatten (batch, electrode) onto rows, cast to bf16 (halves input DMA).
    xp = jnp.pad(x[:, 0].astype(f32),
                 ((0, Npad - N), (0, 0), (pad1, pad1 + Tp1_pad - Tp1)))       # (Npad, C, Tp1_pad)
    x2d = xp.reshape(Npad * C, Tp1_pad).astype(bf16)

    # ---- kernel: whole EEGNet forward for B batch elements (rows = b*F2+f2) ----
    def kernel(x_ref, wspat_ref, wspec_ref, sh12_ref, a1_ref,
               wtemp_ref, wpoint_ref, sh3_ref, a2t_ref, out_ref):
        # spatial depthwise conv (block-diag over batch) on the MXU, on raw input
        y = jnp.dot(wspat_ref[...], x_ref[...],
                    preferred_element_type=f32)                               # (BF2, Tp1_pad)
        # spectral Conv2d(1,F1,(1,T1)) with BN1*BN2 folded into the taps (f32 VPU)
        h = y[:, 0:T_sp] * wspec_ref[0]
        for k in range(1, T1):                                                # T1 small: static unroll
            h = h + y[:, k:k + T_sp] * wspec_ref[k]
        h = h + sh12_ref[...]
        # ELU (EUP; exp guarded on the positive branch)
        h = jnp.where(h > 0, h, jnp.exp(jnp.minimum(h, 0.0)) - 1.0)
        # AvgPool(1,P1)/4 + temporal zero padding, as one bf16 matmul (f32 acc)
        hp = jnp.dot(h.astype(bf16), a1_ref[...], preferred_element_type=f32)  # (BF2, W1_pad)
        # temporal depthwise Conv2d(1,T2) taps (bias folded into sh3)
        g = hp[:, 0:TM] * wtemp_ref[0]
        for k in range(1, T2):
            g = g + hp[:, k:k + TM] * wtemp_ref[k]
        # pointwise 1x1 conv (BN3 scale folded) + combined shift, ELU
        z = jnp.dot(wpoint_ref[...], g.astype(bf16),
                    preferred_element_type=f32) + sh3_ref[...]                # (BF2, TM)
        z = jnp.where(z > 0, z, jnp.exp(jnp.minimum(z, 0.0)) - 1.0)
        # AvgPool(1,P2)/8, emitted transposed so stores are lane-dense:
        #   out^T = a2^T @ z^T   (contract z on its last axis -> no explicit transpose)
        out_ref[...] = lax.dot_general(
            a2t_ref[...], z.astype(bf16),
            dimension_numbers=(((1,), (1,)), ((), ())),
            preferred_element_type=f32)                                       # (Tf_pad, BF2)
        # TODO(synk): nn.Dropout is identity at inference and is omitted (no RNG here).

    def full_spec(a):
        nd = a.ndim
        return pl.BlockSpec(a.shape, lambda i, nd=nd: (0,) * nd)

    # VMEM budget / cost estimate sized from the actual blocks (review item)
    w_bytes = int(sum(w.size * w.dtype.itemsize for w in weights))
    in_blk = BC * Tp1_pad * 2
    out_blk = Tf_pad * BF2 * 4
    inter = 4 * BF2 * (Tp1_pad + 2 * T_sp + W1_pad + 2 * TM)                  # live f32 slabs (rough)
    vmem_limit = int(min(max(2 * (2 * in_blk + 2 * out_blk + 2 * w_bytes + inter),
                             8 * 2 ** 20), 48 * 2 ** 20))
    flops = 2 * G * (BF2 * BC * Tp1_pad + BF2 * T1 * T_sp + BF2 * T_sp * W1_pad
                     + BF2 * T2 * TM + BF2 * BF2 * TM + Tf_pad * TM * BF2)
    cost = pl.CostEstimate(
        flops=int(flops),
        transcendentals=int(G * BF2 * (T_sp + TM)),
        bytes_accessed=int(Npad * C * Tp1_pad * 2 + Tf_pad * Npad * F2 * 4 + G * w_bytes))

    out_t = pl.pallas_call(
        kernel,
        out_shape=jax.ShapeDtypeStruct((Tf_pad, Npad * F2), f32),
        grid=(G,),
        in_specs=[pl.BlockSpec((BC, Tp1_pad), lambda i: (i, 0))]
                 + [full_spec(w) for w in weights],
        out_specs=pl.BlockSpec((Tf_pad, BF2), lambda i: (0, i)),
        compiler_params=pltpu.CompilerParams(
            dimension_semantics=("parallel",),
            vmem_limit_bytes=vmem_limit),
        cost_estimate=cost,
    )(x2d, *weights)

    out = out_t[:Tf].T.reshape(Npad, F2, Tf)[:N]   # drop row/batch padding (glue)
    x_out = out[:, :, None, :]                     # PyTorch `x`      (N, F2, 1, Tf)
    flat = out.reshape(N, F2 * Tf)                 # PyTorch `output` (flatten)
    return x_out, flat


# ------------------------------------------------------------------- pure-JAX reference
def eegnet_reference(x, params, *, F1, D, F2, T1, T2, P1, P2):
    S1, S2 = 4, 8
    pad1, pad2 = T1 // 2, T2 // 2
    dn = ("NCHW", "OIHW", "NCHW")

    def bn(h, prm):
        g, b, m, v = prm
        return (h - m[None, :, None, None]) / jnp.sqrt(v[None, :, None, None] + EPS) \
            * g[None, :, None, None] + b[None, :, None, None]

    h = lax.conv_general_dilated(x, params["w_spec"], (1, 1),
                                 ((0, 0), (pad1, pad1)), dimension_numbers=dn)
    h = bn(h, params["bn1"])
    h = lax.conv_general_dilated(h, _renorm_maxnorm1(params["w_spat"]), (1, 1),
                                 ((0, 0), (0, 0)), dimension_numbers=dn,
                                 feature_group_count=F1)
    h = jax.nn.elu(bn(h, params["bn2"]))
    nw1 = (h.shape[-1] - P1) // S1 + 1                     # kernel == stride here
    h = h[..., :nw1 * P1].reshape(*h.shape[:-1], nw1, P1).mean(-1)
    h = lax.conv_general_dilated(h, params["w_temp"], (1, 1),
                                 ((0, 0), (pad2, pad2)), dimension_numbers=dn,
                                 feature_group_count=F2)
    h = h + params["b_temp"][None, :, None, None]
    h = jnp.einsum("of,nfht->noht", params["w_point"][:, :, 0, 0], h)
    h = jax.nn.elu(bn(h, params["bn3"]))
    nw2 = (h.shape[-1] - P2) // S2 + 1
    h = h[..., :nw2 * P2].reshape(*h.shape[:-1], nw2, P2).mean(-1)
    return h, h.reshape(h.shape[0], -1)


# ------------------------------------------------------------------------------- main
if __name__ == "__main__":
    # small, module-consistent shapes; B=8 -> B*F2=128 rows/step, grid of 2 steps
    N, C, T = 16, 4, 128               # batch, EEG channels, time samples
    F1, D = 8, 2
    F2 = F1 * D                        # F2='auto'
    T1, T2, P1, P2 = 5, 3, 4, 8        # small (odd) temporal kernels, default pools

    key = jax.random.PRNGKey(0)
    kx, kp = jax.random.split(key)
    x = jax.random.normal(kx, (N, 1, C, T), dtype=jnp.float32)
    params = make_params(kp, C, F1, D, F2, T1, T2)

    # one-time folding (kron / renorm / BN folds) hoisted out of the per-call path
    weights, dims = eegnet_fold(params, num_channels=C, F1=F1, D=D, F2=F2,
                                T1=T1, T2=T2, P1=P1, P2=P2, batch=N, time_len=T)
    fwd = jax.jit(lambda xx: eegnet_pallas(xx, weights, dims))

    x_out, flat = fwd(x)
    x_out = jax.block_until_ready(x_out)
    flat = jax.block_until_ready(flat)

    x_ref, flat_ref = eegnet_reference(x, params, F1=F1, D=D, F2=F2,
                                       T1=T1, T2=T2, P1=P1, P2=P2)
    assert x_out.shape == x_ref.shape, (x_out.shape, x_ref.shape)
    assert flat.shape == flat_ref.shape, (flat.shape, flat_ref.shape)
    # bf16 MXU operands (f32 accumulation) vs the f32 reference -> slightly looser tols
    ok = (np.allclose(np.asarray(x_out), np.asarray(x_ref), rtol=3e-2, atol=2e-2) and
          np.allclose(np.asarray(flat), np.asarray(flat_ref), rtol=3e-2, atol=2e-2))
    if not ok:
        raise AssertionError("Pallas EEGNet output does not match JAX reference")
    print("KERNEL_OK")
</pallas_src>

<mosaic_0001>
module attributes {stable_mosaic.version = 11 : i64} {
  func.func @kernel(%arg0: i32, %arg1: memref<32x256xbf16, #tpu.memory_space<vmem>>, %arg2: memref<128x32xbf16, #tpu.memory_space<vmem>>, %arg3: memref<5x128x1xf32, #tpu.memory_space<vmem>>, %arg4: memref<128x1xf32, #tpu.memory_space<vmem>>, %arg5: memref<128x128xbf16, #tpu.memory_space<vmem>>, %arg6: memref<3x128x1xf32, #tpu.memory_space<vmem>>, %arg7: memref<128x128xbf16, #tpu.memory_space<vmem>>, %arg8: memref<128x1xf32, #tpu.memory_space<vmem>>, %arg9: memref<8x32xbf16, #tpu.memory_space<vmem>>, %arg10: memref<8x128xf32, #tpu.memory_space<vmem>>) attributes {dimension_semantics = [#tpu.dimension_semantics<parallel>], iteration_bounds = array<i64: 2>, scalar_prefetch = 0 : i64, scratch_operands = 0 : i64, tpu.core_type = #tpu.core_type<tc>, window_params = [{transform_indices = @transform_0, window_bounds = array<i64: 32, 256>}, {pipeline_mode = #tpu.pipeline_mode<synchronous>, transform_indices = @transform_1, window_bounds = array<i64: 128, 32>}, {pipeline_mode = #tpu.pipeline_mode<synchronous>, transform_indices = @transform_2, window_bounds = array<i64: 5, 128, 1>}, {pipeline_mode = #tpu.pipeline_mode<synchronous>, transform_indices = @transform_3, window_bounds = array<i64: 128, 1>}, {pipeline_mode = #tpu.pipeline_mode<synchronous>, transform_indices = @transform_4, window_bounds = array<i64: 128, 128>}, {pipeline_mode = #tpu.pipeline_mode<synchronous>, transform_indices = @transform_5, window_bounds = array<i64: 3, 128, 1>}, {pipeline_mode = #tpu.pipeline_mode<synchronous>, transform_indices = @transform_6, window_bounds = array<i64: 128, 128>}, {pipeline_mode = #tpu.pipeline_mode<synchronous>, transform_indices = @transform_7, window_bounds = array<i64: 128, 1>}, {pipeline_mode = #tpu.pipeline_mode<synchronous>, transform_indices = @transform_8, window_bounds = array<i64: 8, 32>}, {transform_indices = @transform_9, window_bounds = array<i64: 8, 128>}]} {
    %c0 = arith.constant 0 : index
    %c0_0 = arith.constant 0 : index
    %0 = vector.load %arg2[%c0, %c0_0] : memref<128x32xbf16, #tpu.memory_space<vmem>>, vector<128x32xbf16>
    %c0_1 = arith.constant 0 : index
    %c0_2 = arith.constant 0 : index
    %1 = vector.load %arg1[%c0_1, %c0_2] : memref<32x256xbf16, #tpu.memory_space<vmem>>, vector<32x256xbf16>
    %cst = arith.constant dense<0.000000e+00> : vector<128x256xf32>
    %2 = tpu.matmul %0, %1, %cst {dimension_numbers = #tpu.dot_dimension_numbers<[1], [0], [0], [1], [0, 0, 1, 1], [], []>} : vector<128x32xbf16>, vector<32x256xbf16>, vector<128x256xf32> -> vector<128x256xf32>
    %3 = vector.extract_strided_slice %2 {offsets = [0, 0], sizes = [128, 128], strides = [1, 1]} : vector<128x256xf32> to vector<128x128xf32>
    %c0_3 = arith.constant 0 : index
    %c0_4 = arith.constant 0 : index
    %c0_5 = arith.constant 0 : index
    %4 = vector.load %arg3[%c0_3, %c0_4, %c0_5] : memref<5x128x1xf32, #tpu.memory_space<vmem>>, vector<1x128x1xf32>
    %5 = vector.shape_cast %4 : vector<1x128x1xf32> to vector<128x1xf32>
    %6 = vector.broadcast %5 : vector<128x1xf32> to vector<128x128xf32>
    %7 = arith.mulf %3, %6 : vector<128x128xf32>
    %8 = vector.extract_strided_slice %2 {offsets = [0, 1], sizes = [128, 128], strides = [1, 1]} : vector<128x256xf32> to vector<128x128xf32>
    %c1 = arith.constant 1 : index
    %c0_6 = arith.constant 0 : index
    %c0_7 = arith.constant 0 : index
    %9 = vector.load %arg3[%c1, %c0_6, %c0_7] : memref<5x128x1xf32, #tpu.memory_space<vmem>>, vector<1x128x1xf32>
    %10 = vector.shape_cast %9 : vector<1x128x1xf32> to vector<128x1xf32>
    %11 = vector.broadcast %10 : vector<128x1xf32> to vector<128x128xf32>
    %12 = arith.mulf %8, %11 : vector<128x128xf32>
    %13 = arith.addf %7, %12 : vector<128x128xf32>
    %14 = vector.extract_strided_slice %2 {offsets = [0, 2], sizes = [128, 128], strides = [1, 1]} : vector<128x256xf32> to vector<128x128xf32>
    %c2 = arith.constant 2 : index
    %c0_8 = arith.constant 0 : index
    %c0_9 = arith.constant 0 : index
    %15 = vector.load %arg3[%c2, %c0_8, %c0_9] : memref<5x128x1xf32, #tpu.memory_space<vmem>>, vector<1x128x1xf32>
    %16 = vector.shape_cast %15 : vector<1x128x1xf32> to vector<128x1xf32>
    %17 = vector.broadcast %16 : vector<128x1xf32> to vector<128x128xf32>
    %18 = arith.mulf %14, %17 : vector<128x128xf32>
    %19 = arith.addf %13, %18 : vector<128x128xf32>
    %20 = vector.extract_strided_slice %2 {offsets = [0, 3], sizes = [128, 128], strides = [1, 1]} : vector<128x256xf32> to vector<128x128xf32>
    %c3 = arith.constant 3 : index
    %c0_10 = arith.constant 0 : index
    %c0_11 = arith.constant 0 : index
    %21 = vector.load %arg3[%c3, %c0_10, %c0_11] : memref<5x128x1xf32, #tpu.memory_space<vmem>>, vector<1x128x1xf32>
    %22 = vector.shape_cast %21 : vector<1x128x1xf32> to vector<128x1xf32>
    %23 = vector.broadcast %22 : vector<128x1xf32> to vector<128x128xf32>
    %24 = arith.mulf %20, %23 : vector<128x128xf32>
    %25 = arith.addf %19, %24 : vector<128x128xf32>
    %26 = vector.extract_strided_slice %2 {offsets = [0, 4], sizes = [128, 128], strides = [1, 1]} : vector<128x256xf32> to vector<128x128xf32>
    %c4 = arith.constant 4 : index
    %c0_12 = arith.constant 0 : index
    %c0_13 = arith.constant 0 : index
    %27 = vector.load %arg3[%c4, %c0_12, %c0_13] : memref<5x128x1xf32, #tpu.memory_space<vmem>>, vector<1x128x1xf32>
    %28 = vector.shape_cast %27 : vector<1x128x1xf32> to vector<128x1xf32>
    %29 = vector.broadcast %28 : vector<128x1xf32> to vector<128x128xf32>
    %30 = arith.mulf %26, %29 : vector<128x128xf32>
    %31 = arith.addf %25, %30 : vector<128x128xf32>
    %c0_14 = arith.constant 0 : index
    %c0_15 = arith.constant 0 : index
    %32 = vector.load %arg4[%c0_14, %c0_15] : memref<128x1xf32, #tpu.memory_space<vmem>>, vector<128x1xf32>
    %33 = vector.broadcast %32 : vector<128x1xf32> to vector<128x128xf32>
    %34 = arith.addf %31, %33 : vector<128x128xf32>
    %cst_16 = arith.constant 0.000000e+00 : f32
    %35 = vector.broadcast %cst_16 : f32 to vector<128x128xf32>
    %36 = arith.cmpf ogt, %34, %35 : vector<128x128xf32>
    %cst_17 = arith.constant 0.000000e+00 : f32
    %37 = vector.broadcast %cst_17 : f32 to vector<128x128xf32>
    %38 = arith.minimumf %34, %37 : vector<128x128xf32>
    %39 = math.exp %38 : vector<128x128xf32>
    %cst_18 = arith.constant 1.000000e+00 : f32
    %40 = vector.broadcast %cst_18 : f32 to vector<128x128xf32>
    %41 = arith.subf %39, %40 : vector<128x128xf32>
    %42 = arith.select %36, %34, %41 : vector<128x128xi1>, vector<128x128xf32>
    %43 = arith.truncf %42 : vector<128x128xf32> to vector<128x128xbf16>
    %c0_19 = arith.constant 0 : index
    %c0_20 = arith.constant 0 : index
    %44 = vector.load %arg5[%c0_19, %c0_20] : memref<128x128xbf16, #tpu.memory_space<vmem>>, vector<128x128xbf16>
    %cst_21 = arith.constant dense<0.000000e+00> : vector<128x128xf32>
    %45 = tpu.matmul %43, %44, %cst_21 {dimension_numbers = #tpu.dot_dimension_numbers<[1], [0], [0], [1], [0, 0, 1, 1], [], []>} : vector<128x128xbf16>, vector<128x128xbf16>, vector<128x128xf32> -> vector<128x128xf32>
    %46 = vector.extract_strided_slice %45 {offsets = [0, 0], sizes = [128, 32], strides = [1, 1]} : vector<128x128xf32> to vector<128x32xf32>
    %c0_22 = arith.constant 0 : index
    %c0_23 = arith.constant 0 : index
    %c0_24 = arith.constant 0 : index
    %47 = vector.load %arg6[%c0_22, %c0_23, %c0_24] : memref<3x128x1xf32, #tpu.memory_space<vmem>>, vector<1x128x1xf32>
    %48 = vector.shape_cast %47 : vector<1x128x1xf32> to vector<128x1xf32>
    %49 = vector.broadcast %48 : vector<128x1xf32> to vector<128x32xf32>
    %50 = arith.mulf %46, %49 : vector<128x32xf32>
    %51 = vector.extract_strided_slice %45 {offsets = [0, 1], sizes = [128, 32], strides = [1, 1]} : vector<128x128xf32> to vector<128x32xf32>
    %c1_25 = arith.constant 1 : index
    %c0_26 = arith.constant 0 : index
    %c0_27 = arith.constant 0 : index
    %52 = vector.load %arg6[%c1_25, %c0_26, %c0_27] : memref<3x128x1xf32, #tpu.memory_space<vmem>>, vector<1x128x1xf32>
    %53 = vector.shape_cast %52 : vector<1x128x1xf32> to vector<128x1xf32>
    %54 = vector.broadcast %53 : vector<128x1xf32> to vector<128x32xf32>
    %55 = arith.mulf %51, %54 : vector<128x32xf32>
    %56 = arith.addf %50, %55 : vector<128x32xf32>
    %57 = vector.extract_strided_slice %45 {offsets = [0, 2], sizes = [128, 32], strides = [1, 1]} : vector<128x128xf32> to vector<128x32xf32>
    %c2_28 = arith.constant 2 : index
    %c0_29 = arith.constant 0 : index
    %c0_30 = arith.constant 0 : index
    %58 = vector.load %arg6[%c2_28, %c0_29, %c0_30] : memref<3x128x1xf32, #tpu.memory_space<vmem>>, vector<1x128x1xf32>
    %59 = vector.shape_cast %58 : vector<1x128x1xf32> to vector<128x1xf32>
    %60 = vector.broadcast %59 : vector<128x1xf32> to vector<128x32xf32>
    %61 = arith.mulf %57, %60 : vector<128x32xf32>
    %62 = arith.addf %56, %61 : vector<128x32xf32>
    %c0_31 = arith.constant 0 : index
    %c0_32 = arith.constant 0 : index
    %63 = vector.load %arg7[%c0_31, %c0_32] : memref<128x128xbf16, #tpu.memory_space<vmem>>, vector<128x128xbf16>
    %64 = arith.truncf %62 : vector<128x32xf32> to vector<128x32xbf16>
    %cst_33 = arith.constant dense<0.000000e+00> : vector<128x32xf32>
    %65 = tpu.matmul %63, %64, %cst_33 {dimension_numbers = #tpu.dot_dimension_numbers<[1], [0], [0], [1], [0, 0, 1, 1], [], []>} : vector<128x128xbf16>, vector<128x32xbf16>, vector<128x32xf32> -> vector<128x32xf32>
    %c0_34 = arith.constant 0 : index
    %c0_35 = arith.constant 0 : index
    %66 = vector.load %arg8[%c0_34, %c0_35] : memref<128x1xf32, #tpu.memory_space<vmem>>, vector<128x1xf32>
    %67 = vector.broadcast %66 : vector<128x1xf32> to vector<128x32xf32>
    %68 = arith.addf %65, %67 : vector<128x32xf32>
    %cst_36 = arith.constant 0.000000e+00 : f32
    %69 = vector.broadcast %cst_36 : f32 to vector<128x32xf32>
    %70 = arith.cmpf ogt, %68, %69 : vector<128x32xf32>
    %cst_37 = arith.constant 0.000000e+00 : f32
    %71 = vector.broadcast %cst_37 : f32 to vector<128x32xf32>
    %72 = arith.minimumf %68, %71 : vector<128x32xf32>
    %73 = math.exp %72 : vector<128x32xf32>
    %cst_38 = arith.constant 1.000000e+00 : f32
    %74 = vector.broadcast %cst_38 : f32 to vector<128x32xf32>
    %75 = arith.subf %73, %74 : vector<128x32xf32>
    %76 = arith.select %70, %68, %75 : vector<128x32xi1>, vector<128x32xf32>
    %c0_39 = arith.constant 0 : index
    %c0_40 = arith.constant 0 : index
    %77 = vector.load %arg9[%c0_39, %c0_40] : memref<8x32xbf16, #tpu.memory_space<vmem>>, vector<8x32xbf16>
    %78 = arith.truncf %76 : vector<128x32xf32> to vector<128x32xbf16>
    %cst_41 = arith.constant dense<0.000000e+00> : vector<8x128xf32>
    %79 = tpu.matmul %77, %78, %cst_41 {dimension_numbers = #tpu.dot_dimension_numbers<[1], [1], [0], [0], [0, 0, 1, 0], [], []>} : vector<8x32xbf16>, vector<128x32xbf16>, vector<8x128xf32> -> vector<8x128xf32>
    %c0_42 = arith.constant 0 : index
    %c0_43 = arith.constant 0 : index
    %80 = vector.load %arg10[%c0_42, %c0_43] : memref<8x128xf32, #tpu.memory_space<vmem>>, vector<8x128xf32>
    tpu.vector_store %arg10[%c0_42, %c0_43], %79 {strides = array<i32>} : memref<8x128xf32, #tpu.memory_space<vmem>>, vector<8x128xf32>,
    return
  }
  func.func @transform_0(%arg0: i32) -> (i32, i32) {
    %c0_i32 = arith.constant 0 : i32
    %c0_i32_0 = arith.constant 0 : i32
    return %arg0, %c0_i32 : i32, i32
  }
  func.func @transform_1(%arg0: i32) -> (i32, i32) {
    %c0_i32 = arith.constant 0 : i32
    %c0_i32_0 = arith.constant 0 : i32
    %c0_i32_1 = arith.constant 0 : i32
    return %c0_i32, %c0_i32_0 : i32, i32
  }
  func.func @transform_2(%arg0: i32) -> (i32, i32, i32) {
    %c0_i32 = arith.constant 0 : i32
    %c0_i32_0 = arith.constant 0 : i32
    %c0_i32_1 = arith.constant 0 : i32
    %c0_i32_2 = arith.constant 0 : i32
    return %c0_i32, %c0_i32_0, %c0_i32_1 : i32, i32, i32
  }
  func.func @transform_3(%arg0: i32) -> (i32, i32) {
    %c0_i32 = arith.constant 0 : i32
    %c0_i32_0 = arith.constant 0 : i32
    %c0_i32_1 = arith.constant 0 : i32
    return %c0_i32, %c0_i32_0 : i32, i32
  }
  func.func @transform_4(%arg0: i32) -> (i32, i32) {
    %c0_i32 = arith.constant 0 : i32
    %c0_i32_0 = arith.constant 0 : i32
    %c0_i32_1 = arith.constant 0 : i32
    return %c0_i32, %c0_i32_0 : i32, i32
  }
  func.func @transform_5(%arg0: i32) -> (i32, i32, i32) {
    %c0_i32 = arith.constant 0 : i32
    %c0_i32_0 = arith.constant 0 : i32
    %c0_i32_1 = arith.constant 0 : i32
    %c0_i32_2 = arith.constant 0 : i32
    return %c0_i32, %c0_i32_0, %c0_i32_1 : i32, i32, i32
  }
  func.func @transform_6(%arg0: i32) -> (i32, i32) {
    %c0_i32 = arith.constant 0 : i32
    %c0_i32_0 = arith.constant 0 : i32
    %c0_i32_1 = arith.constant 0 : i32
    return %c0_i32, %c0_i32_0 : i32, i32
  }
  func.func @transform_7(%arg0: i32) -> (i32, i32) {
    %c0_i32 = arith.constant 0 : i32
    %c0_i32_0 = arith.constant 0 : i32
    %c0_i32_1 = arith.constant 0 : i32
    return %c0_i32, %c0_i32_0 : i32, i32
  }
  func.func @transform_8(%arg0: i32) -> (i32, i32) {
    %c0_i32 = arith.constant 0 : i32
    %c0_i32_0 = arith.constant 0 : i32
    %c0_i32_1 = arith.constant 0 : i32
    return %c0_i32, %c0_i32_0 : i32, i32
  }
  func.func @transform_9(%arg0: i32) -> (i32, i32) {
    %c0_i32 = arith.constant 0 : i32
    %c0_i32_0 = arith.constant 0 : i32
    return %c0_i32, %arg0 : i32, i32
  }
}

</mosaic_0001>

<bundles_post_ra>
// kernel: _lambda_.1
= control target key start
LH: loop header
LB: loop body
LE: loop exit
PB: predicated region body
PF: predicated region fallthrough
CT: control target
= control target key end

     0   :  { %14 = vsyncpa [#allocation3], 0  ;;  %s5269_s0 = inlined_call_operand.vmem [shape: bf16[64,256], index: 0, kind: input, shape index: {}]   ;;  %s5270_s1 = inlined_call_operand.vmem [shape: bf16[128,32], index: 1, kind: input, shape index: {}]   ;;  %s5271_s2 = inlined_call_operand.hbm [shape: f32[5,128,1], index: 2, kind: input, shape index: {}]   ;;  %s5272_s3 = inlined_call_operand.vmem [shape: f32[128,1], index: 3, kind: input, shape index: {}]   ;;  %s5273_s4 = inlined_call_operand.hbm [shape: bf16[128,128], index: 4, kind: input, shape index: {}]   ;;  %s5274_s5 = inlined_call_operand.hbm [shape: f32[3,128,1], index: 5, kind: input, shape index: {}]   ;;  %s5275_s6 = inlined_call_operand.hbm [shape: bf16[128,128], index: 6, kind: input, shape index: {}]   ;;  %s5276_s7 = inlined_call_operand.vmem [shape: f32[128,1], index: 7, kind: input, shape index: {}]   ;;  %s5277_s8 = inlined_call_operand.hbm [shape: bf16[8,32], index: 8, kind: input, shape index: {}]   ;;  %s5278_s9 = inlined_call_operand.vmem [shape: f32[8,256], index: 9, kind: output, shape index: {}]  }
   0x1   :  { %15 = vsyncpa [#allocation5], 0 }
   0x2   :  { %16 = vsyncpa [#allocation8], 0  ;;  %s3848_s30 = smov 0  }
   0x3 LB: > { %s3782_s10 = smov [#allocation4]   ;;  %s3854_s12 = sadd.s32 4294967295, %s3780_s30   ;;  %s3780_s30 = sphi %s3848_s30, %s22_s30  }
   0x4   : > { %s278_s11 = sshll.u32 %s3782_s10, 4  ;;  %p3252_p0 = scmp.ge.s32.totalorder %s3780_s30, 1  ;;  %s279_s11 = int_to_ptr.vmem [resolvable:$true] %s278_s11 }
   0x5   : > { %p247_p1 = scmp.lt.s32.totalorder %s3780_s30, 3  ;;  %p5279_p2 = scmp.eq.s32.totalorder %s3854_s12, 0 }
   0x6   : > { %s3783_s14 = smov [#allocation7]   ;;  %s3784_s17 = smov [#allocation2]  }
   0x7   : > { %p3859_p3 = pnand %p3252_p0, %p247_p1  ;;  %s304_s15 = sshll.u32 %s3783_s14, 4  ;;  %s3865_s15 = int_to_ptr.vmem [resolvable:$true] %s304_s15 }
   0x8   : > { %s262_s18 = sshll.u32 %s3784_s17, 4  ;;  %s3643_s20 = scalar_lea.vmem %s279_s11, 1024  ;;  %s3873_s18 = int_to_ptr.vmem [resolvable:$true] %s262_s18 }
   0x9   : > { %s5289_s13 = scalar_select %p3859_p3, 1, 0 }
   0xa   : > { %p3486_p4 = pneg %p3859_p3  ;;  %p3644_p7 = scmp.ne.s32.totalorder %s279_s11, %s3643_s20 }
   0xb   : > { %p3651_p10 = scmp.lt.s32.totalorder %s279_s11, %s279_s11  ;;  %p3652_p11 = scmp.lt.s32.totalorder %s3643_s20, %s3643_s20 }
   0xc   : > { %p3869_p5 = pnand %p5279_p2, %p3486_p4 }
   0xd   : > { %p3653_p12 = por %p3652_p11, %p3651_p10 }
   0xe   : > { %p3877_p6 = pneg %p3869_p5 }
  0x10   : > { %p3646_p8 = pnand %p3644_p7, %p3877_p6 }
  0x12   : > { %p3647_p9 = pneg %p3646_p8 }
  0x14   : > { %p3654_p13 = pnand %p3653_p12, %p3647_p9 }
  0x16   : > { %3657 = shalt.err (!%p3654_p13)
}
  0x17   : > { %s3785_s21 = smov 64   ;;  %s3786_s22 = smov 4  }
  0x18   : > { %3492 = dma.hbm_to_vmem [thread:$0]  (!%p3869_p5), %s5273_s4, 1024, %s279_s11, [#allocation5], %s3785_s21, %s3785_s21, %s3786_s22  }
  0x19   : > { %s3669_s25 = scalar_lea.vmem %s3865_s15, 1024  ;;  %p3677_p7 = scmp.lt.s32.totalorder %s3865_s15, %s3865_s15 }
  0x1a   : > { %p3670_p0 = scmp.ne.s32.totalorder %s3865_s15, %s3669_s25  ;;  %p3678_p8 = scmp.lt.s32.totalorder %s3669_s25, %s3669_s25 }
  0x1c   : > { %p3672_p1 = pnand %p3670_p0, %p3877_p6  ;;  %p3679_p9 = por %p3678_p8, %p3677_p7 }
  0x1e   : > { %p3673_p4 = pneg %p3672_p1 }
  0x20   : > { %p3680_p10 = pnand %p3679_p9, %p3673_p4 }
  0x22   : > { %3683 = shalt.err (!%p3680_p10)
}
  0x23   : > { %3498 = dma.hbm_to_vmem [thread:$0]  (!%p3869_p5), %s5275_s6, 1024, %s3865_s15, [#allocation8], %s3785_s21, %s3785_s21, %s3786_s22  }
  0x24   : > { %s3695_s28 = scalar_lea.vmem %s3873_s18, 10240  ;;  %p3703_p0 = scmp.lt.s32.totalorder %s3873_s18, %s3873_s18 }
  0x25   : > { %p3696_p11 = scmp.ne.s32.totalorder %s3873_s18, %s3695_s28  ;;  %p3704_p1 = scmp.lt.s32.totalorder %s3695_s28, %s3695_s28 }
  0x27   : > { %p3698_p12 = pnand %p3696_p11, %p3877_p6  ;;  %p3705_p4 = por %p3704_p1, %p3703_p0 }
  0x29   : > { %p3699_p13 = pneg %p3698_p12 }
  0x2b   : > { %p3706_p7 = pnand %p3705_p4, %p3699_p13 }
  0x2d   : > { %3709 = shalt.err (!%p3706_p7)
}
  0x2e   : > { %s3787_s29 = smov 128   ;;  %s3788_s10 = smov 8  }
  0x2f   : > { %3489 = dma.hbm_to_vmem [thread:$0]  (!%p3869_p5), %s5271_s2, 10240, %s3873_s18, [#allocation3], %s3787_s29, %s3787_s29, %s3788_s10  }
  0x30   : > { %s3789_s15 = smov [#allocation6]   ;;  %s3790_s20 = smov [#allocation9]  }
  0x31   : > { %s291_s17 = sshll.u32 %s3789_s15, 4  ;;  %s321_s21 = sshll.u32 %s3790_s20, 4  ;;  %s292_s17 = int_to_ptr.vmem [resolvable:$true] %s291_s17  ;;  %s322_s21 = int_to_ptr.vmem [resolvable:$true] %s321_s21 }
  0x32   : > { %s3721_s22 = scalar_lea.vmem %s292_s17, 6144  ;;  %p3729_p11 = scmp.lt.s32.totalorder %s292_s17, %s292_s17 }
  0x33   : > { %p3722_p8 = scmp.ne.s32.totalorder %s292_s17, %s3721_s22  ;;  %p3730_p12 = scmp.lt.s32.totalorder %s3721_s22, %s3721_s22 }
  0x35   : > { %p3724_p9 = pnand %p3722_p8, %p3877_p6  ;;  %p3731_p13 = por %p3730_p12, %p3729_p11 }
  0x37   : > { %p3725_p10 = pneg %p3724_p9 }
  0x39   : > { %p3732_p0 = pnand %p3731_p13, %p3725_p10 }
  0x3b   : > { %3735 = shalt.err (!%p3732_p0)
}
  0x3c   : > { %3495 = dma.hbm_to_vmem [thread:$0]  (!%p3869_p5), %s5274_s5, 6144, %s292_s17, [#allocation5], %s3787_s29, %s3787_s29, %s3788_s10  }
  0x3d   : > { %s3747_s24 = scalar_lea.vmem %s322_s21, 64  ;;  %p3755_p2 = scmp.lt.s32.totalorder %s322_s21, %s322_s21 }
  0x3e   : > { %p3748_p1 = scmp.ne.s32.totalorder %s322_s21, %s3747_s24  ;;  %p3756_p8 = scmp.lt.s32.totalorder %s3747_s24, %s3747_s24 }
  0x40   : > { %p3750_p4 = pnand %p3748_p1, %p3877_p6  ;;  %p3757_p9 = por %p3756_p8, %p3755_p2 }
  0x42   : > { %p3751_p7 = pneg %p3750_p4 }
  0x44   : > { %p3758_p3 = pnand %p3757_p9, %p3751_p7 }
  0x46   : > { %3761 = shalt.err (!%p3758_p3)
}
  0x47   : > { %3501 = dma.hbm_to_vmem [thread:$0]  (!%p3869_p5), %s5277_s8, 64, %s322_s21, [#allocation8]  }
  0x48   : > { %p5292_p10 = scmp.ne.s32.totalorder %s5289_s13, 0 }
  0x4a   : > { %344 = sbr.rel (%p5292_p10) target bundleno = 1617 (0x651), region = 56 }
  0x4f   : > { %p5293_p11 = scmp.eq.s32.totalorder %s3854_s12, 0 }
  0x51   : > { %3767 = dma.done.wait (%p5293_p11), [#allocation3], 10240   ;;  %p5294_p6 = pmov %p5293_p11 }
  0x53   : > { %3769 = vsyncadd (%p5294_p6), [#allocation3], 4294957056  ;;  %p5295_p12 = pmov %p5294_p6 }
  0x54   : > { %p5296_p2 = pmov %p5294_p6 }
  0x55   : > { %3771 = dma.done.wait (%p5295_p12), [#allocation5], 7168  }
  0x56   : > { %3773 = vsyncadd (%p5296_p2), [#allocation5], 4294960128  ;;  %p5297_p3 = pmov %p5296_p2 }
  0x57   : > { %p5298_p5 = pmov %p5296_p2 }
  0x58   : > { %3775 = dma.done.wait (%p5297_p3), [#allocation8], 1088  }
  0x59   : > { %3777 = vsyncadd (%p5298_p5), [#allocation8], 4294966208  ;;  %s3265_s13 = sshll.u32 %s3854_s12, 2  ;;  %v3791_v0 = vmov 0   ;;  %v741_v1 = vld [vmem:[#allocation2 + $0x90] sm:$0xff]  ;;  %v739_v2 = vld [vmem:[#allocation2 + $0x80] sm:$0xff] }
  0x5a   : > { %3537 = vset.pattern.permute.xlu1 %v3791_v0  ;;  %3536 = vset.pattern.permute.xlu0 %v3791_v0  ;;  %p397_p13 = scmp.lt.s32.totalorder %s3265_s13, 7  ;;  %v742_v5 = vld [vmem:[#allocation2 + $0x98] sm:$0xff]  ;;  %v740_v6 = vld [vmem:[#allocation2 + $0x88] sm:$0xff]  ;;  %v1013_v10 = vld [vmem:[#allocation2 + $0x100] sm:$0xff]  ;;  %vm488_vm0 = vcmask 261120   ;;  %s3792_s17 = smov 127  }
  0x5b   : > { %545 = vmatprep.mubr.bf16.mxu0 %v3791_v0  ;;  %767 = vperm.xlu1 %3537, %v741_v1   ;;  %v1014_v9 = vld [vmem:[#allocation2 + $0x108] sm:$0xff]  ;;  %v3544_v11 = vld [vmem:[%s5270_s1] sm:$0xff]   ;;  %v1016_v12 = vld [vmem:[#allocation2 + $0x118] sm:$0xff]  ;;  %s3793_s20 = smov 126   ;;  %s3794_s21 = smov 125   ;;  %vm963_vm1 = vcmask 1039360  }
  0x5c   : > { %s5326_s13 = smov (!%p397_p13, %s3265_s13), 7  ;;  %757 = vperm.xlu0 %3536, %v739_v2   ;;  %v1015_v13 = vld [vmem:[#allocation2 + $0x110] sm:$0xff]  ;;  %v1288_v14 = vld [vmem:[#allocation2 + $0x188] sm:$0xff]  ;;  %v1287_v15 = vld [vmem:[#allocation2 + $0x180] sm:$0xff]  ;;  %s3795_s22 = smov 124   ;;  %vm1237_vm2 = vcmask 1031168  }
  0x5d   : > { %s3340_s16 = sshll.u32 %s5326_s13, 3  ;;  %v3545_v16 = vld [vmem:[%s5270_s1 + $0x8] sm:$0xff]   ;;  %v1290_v17 = vld [vmem:[#allocation2 + $0x198] sm:$0xff]  ;;  %v1289_v18 = vld [vmem:[#allocation2 + $0x190] sm:$0xff]  ;;  %vm1511_vm3 = vcmask 1022976   ;;  %vm1785_vm4 = vcmask 1014784  }
  0x5e   : > { %s401_s28 = scalar_lea.vmem %s5269_s0, %s3340_s16  ;;  %v1562_v19 = vld [vmem:[#allocation2 + $0x208] sm:$0xff]  ;;  %v1561_v20 = vld [vmem:[#allocation2 + $0x200] sm:$0xff]  ;;  %v3546_v21 = vld [vmem:[%s5270_s1 + $0x10] sm:$0xff]   ;;  %p403_p0 = scmp.lt.s32.totalorder %s3854_s12, 1 }
  0x5f   : > { %v3538_v3 = vld [vmem:[%s401_s28 + $0x14] ss:$8 sps:$4 sm:$0xff]   ;;  %v3540_v4 = vld [vmem:[%s401_s28 + $0x10] ss:$8 sps:$4 sm:$0xff]   ;;  %v3541_v7 = vld [vmem:[%s401_s28 + $0x4] ss:$8 sps:$4 sm:$0xff]   ;;  %772 = vperm.xlu1 %3537, %v742_v5  }
  0x60   : > { %525 = vmatprep.subr.bf16.mxu0 %v3538_v3  ;;  %v3543_v8 = vld [vmem:[%s401_s28] ss:$8 sps:$4 sm:$0xff]   ;;  %762 = vperm.xlu0 %3536, %v740_v6   ;;  %v1564_v22 = vld [vmem:[#allocation2 + $0x218] sm:$0xff]  ;;  %v1563_v23 = vld [vmem:[#allocation2 + $0x210] sm:$0xff]  ;;  %s5328_s12 = smov (!%p403_p0, %s3854_s12), 1 }
  0x61   : > { %526 = vmatpush1.bf16.msra.mxu0 %v3540_v4  ;;  %v744_v24 = vld [vmem:[#allocation2 + $0xa8] sm:$0xff]  ;;  %v743_v25 = vld [vmem:[#allocation2 + $0xa0] sm:$0xff]  ;;  %v3547_v26 = vld [vmem:[%s5270_s1 + $0x18] sm:$0xff]   ;;  %s3268_s25 = sshll.u32 %s5328_s12, 3 }
  0x62   : > { %527 = vmatprep.subr.bf16.mxu0 %v3541_v7  ;;  %v746_v27 = vld [vmem:[#allocation2 + $0xb8] sm:$0xff]  ;;  %v745_v28 = vld [vmem:[#allocation2 + $0xb0] sm:$0xff]  ;;  %v1018_v29 = vld [vmem:[#allocation2 + $0x128] sm:$0xff]  ;;  %s406_s16 = scalar_lea.vmem %s5278_s9, %s3268_s25 }
  0x63   : > { %1036 = vperm.xlu1 %3537, %v1014_v9   ;;  %v1017_v30 = vld [vmem:[#allocation2 + $0x120] sm:$0xff]  ;;  %v1020_v32 = vld [vmem:[#allocation2 + $0x138] sm:$0xff]  ;;  %v1019_v33 = vld [vmem:[#allocation2 + $0x130] sm:$0xff] }
  0x64   : > { %1031 = vperm.xlu0 %3536, %v1013_v10   ;;  %v3548_v31 = vld [vmem:[%s5270_s1 + $0x20] sm:$0xff]   ;;  %v1292_v34 = vld [vmem:[#allocation2 + $0x1a8] sm:$0xff]  ;;  %v1294_v37 = vld [vmem:[#allocation2 + $0x1b8] sm:$0xff] }
  0x65   : > { %528 = vmatpush1.bf16.msra.mxu0 %v3543_v8  ;;  %v1291_v35 = vld [vmem:[#allocation2 + $0x1a0] sm:$0xff]  ;;  %v3549_v36 = vld [vmem:[%s5270_s1 + $0x28] sm:$0xff]   ;;  %v1293_v38 = vld [vmem:[#allocation2 + $0x1b0] sm:$0xff] }
  0x66   : > { %v1566_v39 = vld [vmem:[#allocation2 + $0x228] sm:$0xff]  ;;  %v1565_v40 = vld [vmem:[#allocation2 + $0x220] sm:$0xff]  ;;  %v3550_v41 = vld [vmem:[%s5270_s1 + $0x30] sm:$0xff]  }
  0x67   : > { %1046 = vperm.xlu1 %3537, %v1016_v12   ;;  %v1568_v42 = vld [vmem:[#allocation2 + $0x238] sm:$0xff]  ;;  %v1567_v43 = vld [vmem:[#allocation2 + $0x230] sm:$0xff]  ;;  %v748_v44 = vld [vmem:[#allocation2 + $0xc8] sm:$0xff] }
  0x68   : > { %3281 = vmatmul.mubr.msk.bf16.vlgmr.msra.gmra.mxu0 %vm488_vm0, %v3544_v11  ;;  %1041 = vperm.xlu0 %3536, %v1015_v13   ;;  %v747_v45 = vld [vmem:[#allocation2 + $0xc0] sm:$0xff]  ;;  %v3551_v46 = vld [vmem:[%s5270_s1 + $0x38] sm:$0xff]   ;;  %v749_v48 = vld [vmem:[#allocation2 + $0xd0] sm:$0xff] }
  0x69   : > { %555 = vmatprep.mubr.bf16.mxu0 %v3791_v0  ;;  %v750_v47 = vld [vmem:[#allocation2 + $0xd8] sm:$0xff]  ;;  %v1022_v49 = vld [vmem:[#allocation2 + $0x148] sm:$0xff]  ;;  %v1021_v50 = vld [vmem:[#allocation2 + $0x140] sm:$0xff] }
  0x6a   : > { %v1024_v51 = vld [vmem:[#allocation2 + $0x158] sm:$0xff]  ;;  %v1023_v52 = vld [vmem:[#allocation2 + $0x150] sm:$0xff]  ;;  %v1296_v53 = vld [vmem:[#allocation2 + $0x1c8] sm:$0xff] }
  0x6b   : > { %1310 = vperm.xlu1 %3537, %v1288_v14   ;;  %v1295_v54 = vld [vmem:[#allocation2 + $0x1c0] sm:$0xff]  ;;  %v1298_v55 = vld [vmem:[#allocation2 + $0x1d8] sm:$0xff]  ;;  %v1297_v56 = vld [vmem:[#allocation2 + $0x1d0] sm:$0xff] }
  0x6c   : > { %1305 = vperm.xlu0 %3536, %v1287_v15   ;;  %v1570_v57 = vld [vmem:[#allocation2 + $0x248] sm:$0xff]  ;;  %v1569_v58 = vld [vmem:[#allocation2 + $0x240] sm:$0xff]  ;;  %v1572_v59 = vld [vmem:[#allocation2 + $0x258] sm:$0xff] }
  0x6d   : > { %v1571_v60 = vld [vmem:[#allocation2 + $0x250] sm:$0xff]  ;;  %v752_v61 = vld [vmem:[#allocation2 + $0xe8] sm:$0xff]  ;;  %v751_v62 = vld [vmem:[#allocation2 + $0xe0] sm:$0xff] }
  0x6e   : > { %v754_v63 = vld [vmem:[#allocation2 + $0xf8] sm:$0xff]  ;;  %v1026_v1 = vld [vmem:[#allocation2 + $0x168] sm:$0xff]  ;;  %v1025_v2 = vld [vmem:[#allocation2 + $0x160] sm:$0xff] }
  0x6f   : > { %1320 = vperm.xlu1 %3537, %v1290_v17   ;;  %v1028_v3 = vld [vmem:[#allocation2 + $0x178] sm:$0xff]  ;;  %v1027_v4 = vld [vmem:[#allocation2 + $0x170] sm:$0xff]  ;;  %v1300_v5 = vld [vmem:[#allocation2 + $0x1e8] sm:$0xff] }
  0x70   : > { %3282 = vmatmul.mubr.msk.bf16.gmra.mxu0 %vm488_vm0, %v3545_v16  ;;  %1315 = vperm.xlu0 %3536, %v1289_v18   ;;  %v1299_v6 = vld [vmem:[#allocation2 + $0x1e0] sm:$0xff]  ;;  %v1302_v7 = vld [vmem:[#allocation2 + $0x1f8] sm:$0xff]  ;;  %v1301_v8 = vld [vmem:[#allocation2 + $0x1f0] sm:$0xff] }
  0x71   : > { %565 = vmatprep.mubr.bf16.mxu0 %v3791_v0  ;;  %v1574_v9 = vld [vmem:[#allocation2 + $0x268] sm:$0xff]  ;;  %v1573_v10 = vld [vmem:[#allocation2 + $0x260] sm:$0xff]  ;;  %v1576_v11 = vld [vmem:[#allocation2 + $0x278] sm:$0xff] }
  0x72   : > { %v1575_v12 = vld [vmem:[#allocation2 + $0x270] sm:$0xff]  ;;  %v627_v15 = vld [vmem:[#allocation2 + $0x8] sm:$0xff]  ;;  %v626_v16 = vld [vmem:[#allocation2] sm:$0xff] }
  0x73   : > { %1584 = vperm.xlu1 %3537, %v1562_v19   ;;  %v629_v19 = vld [vmem:[#allocation2 + $0x18] sm:$0xff] }
  0x74   : > { %1579 = vperm.xlu0 %3536, %v1561_v20   ;;  %v628_v20 = vld [vmem:[#allocation2 + $0x10] sm:$0xff] }
  0x77   : > { %1594 = vperm.xlu1 %3537, %v1564_v22  }
  0x78   : > { %3283 = vmatmul.mubr.msk.bf16.gmra.mxu0 %vm488_vm0, %v3546_v21  ;;  %1589 = vperm.xlu0 %3536, %v1563_v23   ;;  %v631_v23 = vld [vmem:[#allocation2 + $0x28] sm:$0xff] }
  0x79   : > { %575 = vmatprep.mubr.bf16.mxu0 %v3791_v0 }
  0x7b   : > { %782 = vperm.xlu1 %3537, %v744_v24   ;;  %v630_v24 = vld [vmem:[#allocation2 + $0x20] sm:$0xff] }
  0x7c   : > { %777 = vperm.xlu0 %3536, %v743_v25  }
  0x7f   : > { %792 = vperm.xlu1 %3537, %v746_v27   ;;  %v633_v27 = vld [vmem:[#allocation2 + $0x38] sm:$0xff] }
  0x80   : > { %3284 = vmatmul.mubr.msk.bf16.gmra.mxu0 %vm488_vm0, %v3547_v26  ;;  %787 = vperm.xlu0 %3536, %v745_v28   ;;  %v632_v28 = vld [vmem:[#allocation2 + $0x30] sm:$0xff] }
  0x81   : > { %585 = vmatprep.mubr.bf16.mxu0 %v3791_v0 }
  0x83   : > { %1056 = vperm.xlu1 %3537, %v1018_v29  }
  0x84   : > { %1051 = vperm.xlu0 %3536, %v1017_v30  }
  0x87   : > { %1066 = vperm.xlu1 %3537, %v1020_v32   ;;  %v1834_v32 = vld [vmem:[%s5272_s3] sm:$0xff] }
  0x88   : > { %3285 = vmatmul.mubr.msk.bf16.gmra.mxu0 %vm488_vm0, %v3548_v31  ;;  %1061 = vperm.xlu0 %3536, %v1019_v33   ;;  %v1835_v31 = vld [vmem:[%s5272_s3 + $0x8] sm:$0xff] }
  0x89   : > { %595 = vmatprep.mubr.bf16.mxu0 %v3791_v0 }
  0x8b   : > { %1330 = vperm.xlu1 %3537, %v1292_v34  }
  0x8c   : > { %1325 = vperm.xlu0 %3536, %v1291_v35   ;;  %v1837_v35 = vld [vmem:[%s5272_s3 + $0x18] sm:$0xff] }
  0x8f   : > { %1340 = vperm.xlu1 %3537, %v1294_v37  }
  0x90   : > { %3286 = vmatmul.mubr.msk.bf16.gmra.mxu0 %vm488_vm0, %v3549_v36  ;;  %1335 = vperm.xlu0 %3536, %v1293_v38   ;;  %v1836_v36 = vld [vmem:[%s5272_s3 + $0x10] sm:$0xff] }
  0x91   : > { %605 = vmatprep.mubr.bf16.mxu0 %v3791_v0 }
  0x93   : > { %1604 = vperm.xlu1 %3537, %v1566_v39   ;;  %v635_v39 = vld [vmem:[#allocation2 + $0x48] sm:$0xff] }
  0x94   : > { %1599 = vperm.xlu0 %3536, %v1565_v40   ;;  %v634_v40 = vld [vmem:[#allocation2 + $0x40] sm:$0xff] }
  0x97   : > { %1614 = vperm.xlu1 %3537, %v1568_v42  }
  0x98   : > { %3287 = vmatmul.mubr.msk.bf16.gmra.mxu0 %vm488_vm0, %v3550_v41  ;;  %1609 = vperm.xlu0 %3536, %v1567_v43  }
  0x99   : > { %615 = vmatprep.mubr.bf16.mxu0 %v3791_v0  ;;  %v753_v0 = vld [vmem:[#allocation2 + $0xf0] sm:$0xff] }
  0x9b   : > { %802 = vperm.xlu1 %3537, %v748_v44  }
  0x9c   : > { %797 = vperm.xlu0 %3536, %v747_v45  }
  0x9f   : > { %812 = vperm.xlu1 %3537, %v750_v47  }
  0xa0   : > { %3288 = vmatmul.mubr.msk.bf16.gmra.mxu0 %vm488_vm0, %v3551_v46  ;;  %807 = vperm.xlu0 %3536, %v749_v48  }
  0xa3   : > { %1076 = vperm.xlu1 %3537, %v1022_v49  }
  0xa4   : > { %1071 = vperm.xlu0 %3536, %v1021_v50  }
  0xa7   : > { %1086 = vperm.xlu1 %3537, %v1024_v51  }
  0xa8   : > { %1081 = vperm.xlu0 %3536, %v1023_v52  }
  0xab   : > { %1350 = vperm.xlu1 %3537, %v1296_v53  }
  0xac   : > { %1345 = vperm.xlu0 %3536, %v1295_v54  }
  0xaf   : > { %1360 = vperm.xlu1 %3537, %v1298_v55  }
  0xb0   : > { %1355 = vperm.xlu0 %3536, %v1297_v56  }
  0xb3   : > { %1624 = vperm.xlu1 %3537, %v1570_v57  }
  0xb4   : > { %1619 = vperm.xlu0 %3536, %v1569_v58  }
  0xb7   : > { %1634 = vperm.xlu1 %3537, %v1572_v59  }
  0xb8   : > { %1629 = vperm.xlu0 %3536, %v1571_v60  }
  0xbb   : > { %822 = vperm.xlu1 %3537, %v752_v61  }
  0xbc   : > { %817 = vperm.xlu0 %3536, %v751_v62  }
  0xbf   : > { %832 = vperm.xlu1 %3537, %v754_v63  }
  0xc0   : > { %827 = vperm.xlu0 %3536, %v753_v0  }
  0xc3   : > { %1096 = vperm.xlu1 %3537, %v1026_v1  }
  0xc4   : > { %1091 = vperm.xlu0 %3536, %v1025_v2  }
  0xc7   : > { %1106 = vperm.xlu1 %3537, %v1028_v3  }
  0xc8   : > { %1101 = vperm.xlu0 %3536, %v1027_v4  }
  0xcb   : > { %1370 = vperm.xlu1 %3537, %v1300_v5  }
  0xcc   : > { %1365 = vperm.xlu0 %3536, %v1299_v6  }
  0xcf   : > { %1380 = vperm.xlu1 %3537, %v1302_v7  }
  0xd0   : > { %1375 = vperm.xlu0 %3536, %v1301_v8  }
  0xd3   : > { %1644 = vperm.xlu1 %3537, %v1574_v9  }
  0xd4   : > { %1639 = vperm.xlu0 %3536, %v1573_v10  }
  0xd6   : > { %v3986_v13 = vpop.permute.xlu1 %767 }
  0xd7   : > { %v3988_v14 = vpop.permute.xlu0 %757  ;;  %1654 = vperm.xlu1 %3537, %v1576_v11  }
  0xd8   : > { %1649 = vperm.xlu0 %3536, %v1575_v12  }
  0xda   : > { %v3990_v17 = vpop.permute.xlu1 %772 }
  0xdb   : > { %v3992_v18 = vpop.permute.xlu0 %762  ;;  %649 = vperm.xlu1 %3537, %v627_v15  }
  0xdc   : > { %644 = vperm.xlu0 %3536, %v626_v16  }
  0xde   : > { %v3994_v21 = vpop.permute.xlu1 %1036 }
  0xdf   : > { %v3996_v22 = vpop.permute.xlu0 %1031  ;;  %659 = vperm.xlu1 %3537, %v629_v19  }
  0xe0   : > { %654 = vperm.xlu0 %3536, %v628_v20  }
  0xe2   : > { %v3998_v25 = vpop.permute.xlu1 %1046 }
  0xe3   : > { %v4000_v26 = vpop.permute.xlu0 %1041  ;;  %669 = vperm.xlu1 %3537, %v631_v23  }
  0xe4   : > { %664 = vperm.xlu0 %3536, %v630_v24  }
  0xe6   : > { %v4002_v29 = vpop.permute.xlu1 %1310 }
  0xe7   : > { %v4004_v30 = vpop.permute.xlu0 %1305  ;;  %679 = vperm.xlu1 %3537, %v633_v27  }
  0xe8   : > { %674 = vperm.xlu0 %3536, %v632_v28  }
  0xea   : > { %v4012_v33 = vpop.permute.xlu1 %1320 }
  0xeb   : > { %v4014_v34 = vpop.permute.xlu0 %1315  ;;  %1857 = vperm.xlu1 %3537, %v1835_v31  }
  0xec   : > { %1852 = vperm.xlu0 %3536, %v1834_v32  }
  0xee   : > { %v4022_v37 = vpop.permute.xlu1 %1584 }
  0xef   : > { %v1580_v38 = vpop.permute.xlu0 %1579  ;;  %1867 = vperm.xlu1 %3537, %v1837_v35  }
  0xf0   : > { %1862 = vperm.xlu0 %3536, %v1836_v36  }
  0xf2   : > { %v4024_v41 = vpop.permute.xlu1 %1594 }
  0xf3   : > { %v4026_v42 = vpop.permute.xlu0 %1589  ;;  %689 = vperm.xlu1 %3537, %v635_v39  }
  0xf4   : > { %684 = vperm.xlu0 %3536, %v634_v40  }
  0xf6   : > { %v4028_v43 = vpop.permute.xlu1 %782 }
  0xf7   : > { %v4030_v44 = vpop.permute.xlu0 %777 }
  0xfa   : > { %v4032_v45 = vpop.permute.xlu1 %792 }
  0xfb   : > { %v4034_v46 = vpop.permute.xlu0 %787 }
  0xfe   : > { %v4036_v47 = vpop.permute.xlu1 %1056 }
  0xff   : > { %v4038_v48 = vpop.permute.xlu0 %1051 }
 0x102   : > { %v4040_v49 = vpop.permute.xlu1 %1066 }
 0x103   : > { %v4042_v50 = vpop.permute.xlu0 %1061 }
 0x106   : > { %v4044_v51 = vpop.permute.xlu1 %1330 }
 0x107   : > { %v4046_v52 = vpop.permute.xlu0 %1325 }
 0x10a   : > { %v4048_v53 = vpop.permute.xlu1 %1340 }
 0x10b   : > { %v4050_v54 = vpop.permute.xlu0 %1335 }
 0x10e   : > { %v4052_v55 = vpop.permute.xlu1 %1604 }
 0x10f   : > { %v4054_v56 = vpop.permute.xlu0 %1599 }
 0x112   : > { %v4056_v57 = vpop.permute.xlu1 %1614 }
 0x113   : > { %v4058_v58 = vpop.permute.xlu0 %1609 }
 0x116   : > { %v4060_v59 = vpop.permute.xlu1 %802 }
 0x117   : > { %v4062_v60 = vpop.permute.xlu0 %797 }
 0x11a   : > { %v4064_v61 = vpop.permute.xlu1 %812 }
 0x11b   : > { %v4066_v62 = vpop.permute.xlu0 %807 }
 0x11e   : > { %v4070_v0 = vpop.permute.xlu1 %1076 }
 0x11f   : > { %v4068_v63 = vpop.permute.xlu0 %1071 }
 0x122   : > { %v4076_v3 = vpop.permute.xlu1 %1086 }
 0x123   : > { %v4072_v1 = vpop.permute.xlu0 %1081 }
 0x126   : > { %v4087_v9 = vpop.permute.xlu1 %1350 }
 0x127   : > { %v4082_v7 = vpop.permute.xlu0 %1345 }
 0x128   : > { %v4074_v2 = vpop.f32.mrf.mxu0 }
 0x129   : > { %v835_v4 = vmul.f32 %v3988_v14, %v4074_v2  ;;  %v1109_v8 = vmul.f32 %v3996_v22, %v4074_v2  ;;  %v1383_v11 = vmul.f32 %v4004_v30, %v4074_v2  ;;  %v1657_v19 = vmul.f32 %v1580_v38, %v4074_v2 }
 0x12a   : > { %v549_v5 = vpop.f32.mrf.mxu0  ;;  %v4100_v16 = vpop.permute.xlu1 %1360 }
 0x12b   : > { %899 = vrot.lane.b32.xlu0 %v835_v4, %s3792_s17  ;;  %v836_v6 = vmul.f32 %v3988_v14, %v549_v5  ;;  %v1110_v10 = vmul.f32 %v3996_v22, %v549_v5  ;;  %v4094_v12 = vpop.permute.xlu0 %1355  ;;  %v1384_v14 = vmul.f32 %v4004_v30, %v549_v5  ;;  %v1658_v20 = vmul.f32 %v1580_v38, %v549_v5 }
 0x12c   : > { %v4098_v15 = vpop.f32.mrf.mxu0 }
 0x12d   : > { %901 = vrot.lane.b32.xlu1 %v836_v6, %s3792_s17  ;;  %v837_v24 = vmul.f32 %v3992_v18, %v4098_v15  ;;  %v1111_v30 = vmul.f32 %v3994_v21, %v4098_v15  ;;  %v1385_v36 = vmul.f32 %v4002_v29, %v4098_v15 }
 0x12e   : > { %v553_v22 = vpop.f32.mrf.mxu0  ;;  %v4110_v27 = vpop.permute.xlu1 %1624 }
 0x12f   : > { %1173 = vrot.lane.b32.xlu0 %v1109_v8, %s3793_s20  ;;  %v4105_v23 = vpop.permute.xlu0 %1619  ;;  %v838_v28 = vmul.f32 %v3992_v18, %v553_v22  ;;  %v1112_v32 = vmul.f32 %v3994_v21, %v553_v22  ;;  %v1386_v18 = vmul.f32 %v4002_v29, %v553_v22  ;;  %v1659_v21 = vmul.f32 %v4022_v37, %v4098_v15 }
 0x130   : > { %v4128_v38 = vpop.f32.mrf.mxu0  ;;  %v1660_v4 = vmul.f32 %v4022_v37, %v553_v22 }
 0x131   : > { %1175 = vrot.lane.b32.xlu1 %v1110_v10, %s3793_s20  ;;  %v839_v29 = vmul.f32 %v3986_v13, %v4128_v38 }
 0x132   : > { %v4121_v35 = vpop.permute.xlu1 %1634  ;;  %v559_v5 = vpop.f32.mrf.mxu0 }
 0x133   : > { %1447 = vrot.lane.b32.xlu0 %v1383_v11, %s3794_s21  ;;  %v4117_v31 = vpop.permute.xlu0 %1629  ;;  %v840_v8 = vmul.f32 %v3986_v13, %v559_v5  ;;  %v1113_v11 = vmul.f32 %v4000_v26, %v4128_v38  ;;  %v1114_v37 = vmul.f32 %v4000_v26, %v559_v5  ;;  %v1388_v13 = vmul.f32 %v4014_v34, %v559_v5 }
 0x134   : > { %v4162_v22 = vpop.f32.mrf.mxu0  ;;  %v1661_v26 = vmul.f32 %v4026_v42, %v4128_v38 }
 0x135   : > { %1449 = vrot.lane.b32.xlu1 %v1384_v14, %s3794_s21 }
 0x136   : > { %v4135_v40 = vpop.permute.xlu1 %822 }
 0x137   : > { %1721 = vrot.lane.b32.xlu0 %v1657_v19, %s3795_s22  ;;  %v4130_v39 = vpop.permute.xlu0 %817  ;;  %v1387_v19 = vmul.f32 %v4014_v34, %v4128_v38 }
 0x139   : > { %1723 = vrot.lane.b32.xlu1 %v1658_v20, %s3795_s22 }
 0x13a   : > { %v4146_v10 = vpop.permute.xlu1 %832 }
 0x13b   : > { %903 = vrot.lane.b32.xlu0 %v837_v24, %s3792_s17  ;;  %v4142_v6 = vpop.permute.xlu0 %827  ;;  %v3552_v24 = vld [vmem:[#allocation4 + $0x38] sm:$0xff]  }
 0x13c   : > { %3382 = vmatprep.subr.bf16.mxu1 %v3552_v24 }
 0x13d   : > { %905 = vrot.lane.b32.xlu1 %v838_v28, %s3792_s17  ;;  %v1662_v28 = vmul.f32 %v4026_v42, %v559_v5  ;;  %3383 = vmatpush3.bf16.msra.mxu1 %v3552_v24  ;;  %v3554_v5 = vld [vmem:[#allocation4 + $0x28] sm:$0xff]   ;;  %v1663_v24 = vmul.f32 %v4024_v41, %v4162_v22 }
 0x13e   : > { %v4159_v20 = vpop.permute.xlu1 %1096 }
 0x13f   : > { %1177 = vrot.lane.b32.xlu0 %v1111_v30, %s3793_s20  ;;  %v4153_v14 = vpop.permute.xlu0 %1091 }
 0x141   : > { %1179 = vrot.lane.b32.xlu1 %v1112_v32, %s3793_s20  ;;  %v563_v32 = vpop.f32.mrf.mxu0 }
 0x142   : > { %v4171_v34 = vpop.permute.xlu1 %1106 }
 0x143   : > { %1451 = vrot.lane.b32.xlu0 %v1385_v36, %s3794_s21  ;;  %v4168_v30 = vpop.permute.xlu0 %1101  ;;  %v841_v36 = vmul.f32 %v3990_v17, %v4162_v22 }
 0x145   : > { %1453 = vrot.lane.b32.xlu1 %v1386_v18, %s3794_s21  ;;  %v3553_v18 = vld [vmem:[#allocation4 + $0x30] sm:$0xff]  }
 0x146   : > { %3384 = vmatprep.subr.bf16.mxu1 %v3553_v18 }
 0x147   : > { %1725 = vrot.lane.b32.xlu0 %v1659_v21, %s3795_s22  ;;  %v842_v21 = vmul.f32 %v3990_v17, %v563_v32  ;;  %v4178_v42 = vpop.permute.xlu0 %1365  ;;  %3385 = vmatpush3.bf16.msra.mxu1 %v3553_v18  ;;  %v1389_v17 = vmul.f32 %v4012_v33, %v4162_v22 }
 0x148   : > { %5299 = vst [vmem:[#allocation13_spill] sm:$0xff] %v4178_v42  ;;  %3386 = vmatprep.subr.bf16.mxu1 %v3554_v5 }
 0x149   : > { %1727 = vrot.lane.b32.xlu1 %v1660_v4, %s3795_s22  ;;  %v1115_v4 = vmul.f32 %v3998_v25, %v4162_v22 }
 0x14b   : > { %907 = vrot.lane.b32.xlu0 %v839_v29, %s3792_s17  ;;  %v1116_v29 = vmul.f32 %v3998_v25, %v563_v32  ;;  %3387 = vmatpush3.bf16.msra.mxu1 %v3554_v5 }
 0x14d   : > { %909 = vrot.lane.b32.xlu1 %v840_v8, %s3792_s17  ;;  %v4184_v8 = vpop.permute.xlu1 %1370 }
 0x14e   : > { %5300 = vst [vmem:[#allocation14_spill] sm:$0xff] %v4184_v8 }
 0x14f   : > { %1181 = vrot.lane.b32.xlu0 %v1113_v11, %s3793_s20  ;;  %v4187_v11 = vpop.f32.mrf.mxu0 }
 0x151   : > { %1183 = vrot.lane.b32.xlu1 %v1114_v37, %s3793_s20  ;;  %v3555_v37 = vld [vmem:[#allocation4 + $0x20] sm:$0xff]   ;;  %v4196_v25 = vpop.f32.mrf.mxu0 }
 0x152   : > { %3388 = vmatprep.subr.bf16.mxu1 %v3555_v37  ;;  %v844_v5 = vmul.f32 %v4030_v44, %v4196_v25 }
 0x153   : > { %1455 = vrot.lane.b32.xlu0 %v1387_v19, %s3794_s21  ;;  %v1390_v19 = vmul.f32 %v4012_v33, %v563_v32  ;;  %3389 = vmatpush3.bf16.msra.mxu1 %v3555_v37  ;;  %v4205_v33 = vpop.f32.mrf.mxu0  ;;  %v1118_v37 = vmul.f32 %v4038_v48, %v4196_v25 }
 0x155   : > { %1457 = vrot.lane.b32.xlu1 %v1388_v13, %s3794_s21  ;;  %v4193_v13 = vpop.permute.xlu0 %1375 }
 0x156   : > { %5301 = vst [vmem:[#allocation15_spill] sm:$0xff] %v4193_v13 }
 0x157   : > { %1729 = vrot.lane.b32.xlu0 %v1661_v26, %s3795_s22  ;;  %v4198_v26 = vpop.permute.xlu1 %1380 }
 0x158   : > { %5302 = vst [vmem:[#allocation16_spill] sm:$0xff] %v4198_v26 }
 0x159   : > { %1731 = vrot.lane.b32.xlu1 %v1662_v28, %s3795_s22  ;;  %v3556_v28 = vld [vmem:[#allocation4 + $0x18] sm:$0xff]   ;;  %v4207_v18 = vpop.permute.xlu0 %1639 }
 0x15a   : > { %3390 = vmatprep.subr.bf16.mxu1 %v3556_v28  ;;  %5303 = vst [vmem:[#allocation17_spill] sm:$0xff] %v4207_v18 }
 0x15b   : > { %911 = vrot.lane.b32.xlu0 %v841_v36, %s3792_s17  ;;  %v1664_v36 = vmul.f32 %v4024_v41, %v563_v32  ;;  %3391 = vmatpush3.bf16.msra.mxu1 %v3556_v28  ;;  %v4217_v41 = vpop.f32.mrf.mxu0  ;;  %v1117_v32 = vmul.f32 %v4038_v48, %v4187_v11  ;;  %v845_v28 = vmul.f32 %v4028_v43, %v4205_v33 }
 0x15d   : > { %913 = vrot.lane.b32.xlu1 %v842_v21, %s3792_s17  ;;  %v843_v21 = vmul.f32 %v4030_v44, %v4187_v11  ;;  %v4227_v44 = vpop.f32.mrf.mxu0 }
 0x15f   : > { %1185 = vrot.lane.b32.xlu0 %v1115_v4, %s3793_s20  ;;  %v3557_v4 = vld [vmem:[#allocation4 + $0x10] sm:$0xff]   ;;  %v4237_v48 = vpop.f32.mrf.mxu0 }
 0x160   : > { %3392 = vmatprep.subr.bf16.mxu1 %v3557_v4 }
 0x161   : > { %1187 = vrot.lane.b32.xlu1 %v1116_v29, %s3793_s20  ;;  %v4214_v29 = vpop.permute.xlu1 %1644  ;;  %3393 = vmatpush3.bf16.msra.mxu1 %v3557_v4 }
 0x162   : > { %5304 = vst [vmem:[#allocation18_spill] sm:$0xff] %v4214_v29  ;;  %v1122_v29 = vmul.f32 %v4042_v50, %v4237_v48 }
 0x163   : > { %1459 = vrot.lane.b32.xlu0 %v1389_v17, %s3794_s21  ;;  %v3558_v17 = vld [vmem:[#allocation4 + $0x8] sm:$0xff]  }
 0x164   : > { %3394 = vmatprep.subr.bf16.mxu1 %v3558_v17 }
 0x165   : > { %1461 = vrot.lane.b32.xlu1 %v1390_v19, %s3794_s21  ;;  %v4224_v19 = vpop.permute.xlu0 %1649  ;;  %3395 = vmatpush3.bf16.msra.mxu1 %v3558_v17 }
 0x166   : > { %5305 = vst [vmem:[#allocation19_spill] sm:$0xff] %v4224_v19 }
 0x167   : > { %1733 = vrot.lane.b32.xlu0 %v1663_v24, %s3795_s22  ;;  %v4229_v24 = vpop.permute.xlu1 %1654 }
 0x168   : > { %5306 = vst [vmem:[#allocation20_spill] sm:$0xff] %v4229_v24  ;;  %v636_v24 = vld [vmem:[#allocation2 + $0x50] sm:$0xff] }
 0x169   : > { %1735 = vrot.lane.b32.xlu1 %v1664_v36, %s3795_s22  ;;  %v3559_v36 = vld [vmem:[#allocation4] sm:$0xff]   ;;  %v4239_v4 = vpop.permute.xlu0 %644 }
 0x16a   : > { %3396 = vmatprep.subr.bf16.mxu1 %v3559_v36 }
 0x16b   : > { %915 = vrot.lane.b32.xlu0 %v843_v21, %s3792_s17  ;;  %v846_v21 = vmul.f32 %v4028_v43, %v4217_v41  ;;  %3397 = vmatpush3.bf16.msra.mxu1 %v3559_v36  ;;  %v4246_v17 = vpop.permute.xlu1 %649  ;;  %v4249_v43 = vpop.f32.mrf.mxu0 }
 0x16d   : > { %917 = vrot.lane.b32.xlu1 %v844_v5, %s3792_s17  ;;  %v1119_v5 = vmul.f32 %v4036_v47, %v4205_v33  ;;  %v4259_v36 = vpop.f32.mrf.mxu0 }
 0x16f   : > { %1189 = vrot.lane.b32.xlu0 %v1117_v32, %s3793_s20  ;;  %v1120_v32 = vmul.f32 %v4036_v47, %v4217_v41  ;;  %v4261_v47 = vpop.permute.xlu1 %659 }
 0x171   : > { %1191 = vrot.lane.b32.xlu1 %v1118_v37, %s3793_s20  ;;  %v847_v37 = vmul.f32 %v4034_v46, %v4227_v44 }
 0x173   : > { %919 = vrot.lane.b32.xlu0 %v845_v28, %s3792_s17  ;;  %v848_v28 = vmul.f32 %v4034_v46, %v4237_v48  ;;  %v4272_v19 = vpop.permute.xlu1 %669 }
 0x174   : > { %5307 = vst [vmem:[#allocation21_spill] sm:$0xff] %v4272_v19 }
 0x175   : > { %921 = vrot.lane.b32.xlu1 %v846_v21, %s3792_s17  ;;  %v4256_v21 = vpop.permute.xlu0 %654 }
 0x177   : > { %1193 = vrot.lane.b32.xlu0 %v1119_v5, %s3793_s20  ;;  %v849_v5 = vmul.f32 %v4032_v45, %v4249_v43 }
 0x179   : > { %1195 = vrot.lane.b32.xlu1 %v1120_v32, %s3793_s20  ;;  %v850_v32 = vmul.f32 %v4032_v45, %v4259_v36  ;;  %v4269_v46 = vpop.permute.xlu0 %664  ;;  %v4281_v45 = vpop.permute.xlu1 %679 }
 0x17a   : > { %5309 = vst [vmem:[#allocation23_spill] sm:$0xff] %v4281_v45  ;;  %v1666_v45 = vmul.f32 %v4054_v56, %v4196_v25 }
 0x17b   : > { %923 = vrot.lane.b32.xlu0 %v847_v37, %s3792_s17  ;;  %v637_v37 = vld [vmem:[#allocation2 + $0x58] sm:$0xff] }
 0x17d   : > { %925 = vrot.lane.b32.xlu1 %v848_v28, %s3792_s17  ;;  %v1121_v28 = vmul.f32 %v4042_v50, %v4227_v44  ;;  %v4278_v18 = vpop.permute.xlu0 %674  ;;  %v1391_v50 = vmul.f32 %v4046_v52, %v4187_v11 }
 0x17e   : > { %5308 = vst [vmem:[#allocation22_spill] sm:$0xff] %v4278_v18 }
 0x17f   : > { %927 = vrot.lane.b32.xlu0 %v849_v5, %s3792_s17  ;;  %v1123_v5 = vmul.f32 %v4040_v49, %v4249_v43 }
 0x181   : > { %929 = vrot.lane.b32.xlu1 %v850_v32, %s3792_s17  ;;  %v4289_v32 = vpop.permute.xlu0 %1852 }
 0x183   : > { %694 = vperm.xlu0 %3536, %v636_v24   ;;  %v1124_v24 = vmul.f32 %v4040_v49, %v4259_v36  ;;  %v1393_v49 = vmul.f32 %v4044_v51, %v4205_v33 }
 0x185   : > { %699 = vperm.xlu1 %3537, %v637_v37   ;;  %v1392_v37 = vmul.f32 %v4046_v52, %v4196_v25  ;;  %v1838_v52 = vld [vmem:[%s5272_s3 + $0x20] sm:$0xff]  ;;  %v1668_v25 = vmul.f32 %v4052_v55, %v4217_v41 }
 0x187   : > { %1197 = vrot.lane.b32.xlu0 %v1121_v28, %s3793_s20  ;;  %v4296_v28 = vpop.permute.xlu1 %1857 }
 0x189   : > { %1199 = vrot.lane.b32.xlu1 %v1122_v29, %s3793_s20  ;;  %v1394_v29 = vmul.f32 %v4044_v51, %v4217_v41  ;;  %v1395_v51 = vmul.f32 %v4050_v54, %v4227_v44 }
 0x18b   : > { %1201 = vrot.lane.b32.xlu0 %v1123_v5, %s3793_s20  ;;  %v4304_v5 = vpop.permute.xlu0 %1862 }
 0x18d   : > { %1203 = vrot.lane.b32.xlu1 %v1124_v24, %s3793_s20  ;;  %v4310_v24 = vpop.permute.xlu1 %1867 }
 0x18f   : > { %1463 = vrot.lane.b32.xlu0 %v1391_v50, %s3794_s21  ;;  %v1839_v50 = vld [vmem:[%s5272_s3 + $0x28] sm:$0xff] }
 0x191   : > { %1465 = vrot.lane.b32.xlu1 %v1392_v37, %s3794_s21  ;;  %v4316_v37 = vpop.permute.xlu0 %684  ;;  %v4322_v26 = vpop.permute.xlu1 %689 }
 0x192   : > { %5310 = vst [vmem:[#allocation24_spill] sm:$0xff] %v4316_v37  ;;  %5311 = vst [vmem:[#allocation25_spill] sm:$0xff] %v4322_v26  ;;  %v4338_v26 = vpop.f32.mrf.mxu0 }
 0x193   : > { %1467 = vrot.lane.b32.xlu0 %v1393_v49, %s3794_s21  ;;  %v1396_v49 = vmul.f32 %v4050_v54, %v4237_v48  ;;  %v1840_v54 = vld [vmem:[%s5272_s3 + $0x30] sm:$0xff] }
 0x195   : > { %1469 = vrot.lane.b32.xlu1 %v1394_v29, %s3794_s21  ;;  %v1397_v29 = vmul.f32 %v4048_v53, %v4249_v43 }
 0x197   : > { %1872 = vperm.xlu0 %3536, %v1838_v52   ;;  %v1398_v52 = vmul.f32 %v4048_v53, %v4259_v36 }
 0x199   : > { %1877 = vperm.xlu1 %3537, %v1839_v50  }
 0x19b   : > { %1471 = vrot.lane.b32.xlu0 %v1395_v51, %s3794_s21  ;;  %v1841_v51 = vld [vmem:[%s5272_s3 + $0x38] sm:$0xff] }
 0x19d   : > { %v900_v13 = vpop.permute.xlu0 %899  ;;  %1473 = vrot.lane.b32.xlu1 %v1396_v49, %s3794_s21 }
 0x19f   : > { %v902_v50 = vpop.permute.xlu1 %901  ;;  %1475 = vrot.lane.b32.xlu0 %v1397_v29, %s3794_s21  ;;  %v1665_v29 = vmul.f32 %v4054_v56, %v4187_v11 }
 0x1a0   : > { %v964_v18 = vsel %vm963_vm1, %v900_v13, %v902_v50 }
 0x1a1   : > { %v1174_v37 = vpop.permute.xlu0 %1173  ;;  %1477 = vrot.lane.b32.xlu1 %v1398_v52, %s3794_s21  ;;  %v4345_v52 = vpop.f32.mrf.mxu0 }
 0x1a3   : > { %v1176_v49 = vpop.permute.xlu1 %1175  ;;  %1882 = vperm.xlu0 %3536, %v1840_v54   ;;  %v722_v54 = vmul.f32 %v4239_v4, %v4074_v2  ;;  %v4357_v13 = vpop.f32.mrf.mxu0 }
 0x1a4   : > { %v1238_v56 = vsel %vm1237_vm2, %v1174_v37, %v1176_v49 }
 0x1a5   : > { %v1448_v53 = vpop.permute.xlu0 %1447  ;;  %1887 = vperm.xlu1 %3537, %v1841_v51   ;;  %v1667_v51 = vmul.f32 %v4052_v55, %v4205_v33  ;;  %v1670_v55 = vmul.f32 %v4058_v58, %v4237_v48  ;;  %v4367_v49 = vpop.f32.mrf.mxu0  ;;  %v723_v48 = vmul.f32 %v4246_v17, %v4098_v15 }
 0x1a7   : > { %v1450_v8 = vpop.permute.xlu1 %1449  ;;  %1737 = vrot.lane.b32.xlu0 %v1665_v29, %s3795_s22  ;;  %v996_v29 = vadd.f32 %v964_v18, %v722_v54 }
 0x1a8   : > { %v1512_v2 = vsel %vm1511_vm3, %v1448_v53, %v1450_v8  ;;  %v1671_v53 = vmul.f32 %v4056_v57, %v4249_v43 }
 0x1a9   : > { %v1722_v42 = vpop.permute.xlu0 %1721  ;;  %1739 = vrot.lane.b32.xlu1 %v1666_v45, %s3795_s22  ;;  %v1270_v4 = vadd.f32 %v1238_v56, %v996_v29  ;;  %v1669_v45 = vmul.f32 %v4058_v58, %v4227_v44  ;;  %v4375_v58 = vpop.f32.mrf.mxu0  ;;  %v851_v29 = vmul.f32 %v4062_v60, %v4338_v26 }
 0x1ab   : > { %v1724_v19 = vpop.permute.xlu1 %1723  ;;  %1741 = vrot.lane.b32.xlu0 %v1667_v51, %s3795_s22  ;;  %v1544_v18 = vadd.f32 %v1512_v2, %v1270_v4  ;;  %v1672_v51 = vmul.f32 %v4056_v57, %v4259_v36  ;;  %v852_v36 = vmul.f32 %v4062_v60, %v4345_v52  ;;  %v854_v60 = vmul.f32 %v4060_v59, %v4367_v49 }
 0x1ac   : > { %v1786_v37 = vsel %vm1785_vm4, %v1722_v42, %v1724_v19 }
 0x1ad   : > { %v904_v50 = vpop.permute.xlu0 %903  ;;  %1743 = vrot.lane.b32.xlu1 %v1668_v25, %s3795_s22  ;;  %v1818_v54 = vadd.f32 %v1786_v37, %v1544_v18  ;;  %v853_v37 = vmul.f32 %v4060_v59, %v4357_v13 }
 0x1af   : > { %v906_v41 = vpop.permute.xlu1 %905  ;;  %1745 = vrot.lane.b32.xlu0 %v1669_v45, %s3795_s22  ;;  %v4381_v56 = vadd.f32 %v4289_v32, %v1818_v54 }
 0x1b0   : > { %v965_v19 = vsel %vm963_vm1, %v904_v50, %v906_v41  ;;  %v4390_v50 = vpop.f32.mrf.mxu0 }
 0x1b1   : > { %v1178_v8 = vpop.permute.xlu0 %1177  ;;  %1747 = vrot.lane.b32.xlu1 %v1670_v55, %s3795_s22  ;;  %v997_v2 = vadd.f32 %v965_v19, %v723_v48  ;;  %v1962_v17 = vmin.f32 %v4381_v56, 0.0  ;;  %v856_v19 = vmul.f32 %v4066_v62, %v4390_v50  ;;  %vm1946_vm5 = vcmp.gt.f32.partialorder %v4381_v56, 0.0 }
 0x1b2   : > { %v4400_v41 = vpop.f32.mrf.mxu0 }
 0x1b3   : > { %v1180_v42 = vpop.permute.xlu1 %1179  ;;  %1749 = vrot.lane.b32.xlu0 %v1671_v53, %s3795_s22 }
 0x1b4   : > { %v1239_v57 = vsel %vm1237_vm2, %v1178_v8, %v1180_v42  ;;  %v1978_v42 = vmul.f32 1.442695, %v1962_v17  ;;  %v639_v17 = vld [vmem:[#allocation2 + $0x68] sm:$0xff] }
 0x1b5   : > { %v1452_v25 = vpop.permute.xlu0 %1451  ;;  %1751 = vrot.lane.b32.xlu1 %v1672_v51, %s3795_s22  ;;  %v1271_v32 = vadd.f32 %v1239_v57, %v997_v2  ;;  %v855_v51 = vmul.f32 %v4066_v62, %v4375_v58 }
 0x1b6   : > { %3568 = vpow2.f32 %v1978_v42 }
 0x1b7   : > { %v1454_v4 = vpop.permute.xlu1 %1453  ;;  %931 = vrot.lane.b32.xlu0 %v851_v29, %s3792_s17 }
 0x1b8   : > { %v1513_v15 = vsel %vm1511_vm3, %v1452_v25, %v1454_v4  ;;  %v4410_v25 = vpop.f32.mrf.mxu0 }
 0x1b9   : > { %v1726_v45 = vpop.permute.xlu0 %1725  ;;  %933 = vrot.lane.b32.xlu1 %v852_v36, %s3792_s17  ;;  %v1545_v55 = vadd.f32 %v1513_v15, %v1271_v32  ;;  %v857_v36 = vmul.f32 %v4064_v61, %v4400_v41  ;;  %v858_v2 = vmul.f32 %v4064_v61, %v4410_v25  ;;  %v1125_v61 = vmul.f32 %v4068_v63, %v4338_v26 }
 0x1bb   : > { %v1728_v18 = vpop.permute.xlu1 %1727  ;;  %935 = vrot.lane.b32.xlu0 %v853_v37, %s3792_s17  ;;  %v724_v37 = vmul.f32 %v4256_v21, %v4128_v38  ;;  %v1127_v38 = vmul.f32 %v4070_v0, %v4357_v13 }
 0x1bc   : > { %v1787_v54 = vsel %vm1785_vm4, %v1726_v45, %v1728_v18  ;;  %v1126_v18 = vmul.f32 %v4068_v63, %v4345_v52 }
 0x1bd   : > { %v1819_v8 = vadd.f32 %v1787_v54, %v1545_v55  ;;  %v908_v53 = vpop.permute.xlu0 %907  ;;  %937 = vrot.lane.b32.xlu1 %v854_v60, %s3792_s17 }
 0x1bf   : > { %v1931_v59 = vadd.f32 %v4296_v28, %v1819_v8  ;;  %v910_v48 = vpop.permute.xlu1 %909  ;;  %939 = vrot.lane.b32.xlu0 %v855_v51, %s3792_s17  ;;  %v638_v28 = vld [vmem:[#allocation2 + $0x60] sm:$0xff] }
 0x1c0   : > { %v966_v45 = vsel %vm963_vm1, %v908_v53, %v910_v48  ;;  %v1128_v48 = vmul.f32 %v4070_v0, %v4367_v49  ;;  %v1129_v0 = vmul.f32 %v4072_v1, %v4375_v58 }
 0x1c1   : > { %v1963_v29 = vmin.f32 %v1931_v59, 0.0  ;;  %v1182_v57 = vpop.permute.xlu0 %1181  ;;  %941 = vrot.lane.b32.xlu1 %v856_v19, %s3792_s17  ;;  %v998_v54 = vadd.f32 %v966_v45, %v724_v37  ;;  %vm1947_vm6 = vcmp.gt.f32.partialorder %v1931_v59, 0.0  ;;  %v725_v45 = vmul.f32 %v4261_v47, %v4162_v22 }
 0x1c3   : > { %v1184_v4 = vpop.permute.xlu1 %1183  ;;  %943 = vrot.lane.b32.xlu0 %v857_v36, %s3792_s17  ;;  %v1980_v62 = vmul.f32 1.442695, %v1963_v29  ;;  %v3569_v21 = vpop.eup %3568 }
 0x1c4   : > { %v1240_v55 = vsel %vm1237_vm2, %v1182_v57, %v1184_v4  ;;  %v640_v57 = vld [vmem:[#allocation2 + $0x70] sm:$0xff]  ;;  %v3289_v4 = vadd.f32 -1.0, %v3569_v21 }
 0x1c5   : > { %v1456_v15 = vpop.permute.xlu0 %1455  ;;  %945 = vrot.lane.b32.xlu1 %v858_v2, %s3792_s17  ;;  %3570 = vpow2.f32 %v1980_v62  ;;  %v1272_v53 = vadd.f32 %v1240_v55, %v998_v54 }
 0x1c7   : > { %v1458_v32 = vpop.permute.xlu1 %1457  ;;  %704 = vperm.xlu0 %3536, %v638_v28   ;;  %v641_v28 = vld [vmem:[#allocation2 + $0x78] sm:$0xff] }
 0x1c8   : > { %v1514_v51 = vsel %vm1511_vm3, %v1456_v15, %v1458_v32 }
 0x1c9   : > { %v1730_v60 = vpop.permute.xlu0 %1729  ;;  %709 = vperm.xlu1 %3537, %v639_v17   ;;  %v1546_v63 = vadd.f32 %v1514_v51, %v1272_v53 }
 0x1cb   : > { %v1732_v8 = vpop.permute.xlu1 %1731  ;;  %1205 = vrot.lane.b32.xlu0 %v1125_v61, %s3793_s20  ;;  %v2026_v61 = vsel %vm1946_vm5, %v4381_v56, %v3289_v4  ;;  %v1131_v56 = vmul.f32 %v4076_v3, %v4400_v41  ;;  %v1401_v4 = vmul.f32 %v4087_v9, %v4357_v13 }
 0x1cc   : > { %v1788_v19 = vsel %vm1785_vm4, %v1730_v60, %v1732_v8  ;;  %v1130_v8 = vmul.f32 %v4072_v1, %v4390_v50 }
 0x1cd   : > { %v912_v42 = vpop.permute.xlu0 %911  ;;  %1207 = vrot.lane.b32.xlu1 %v1126_v18, %s3793_s20  ;;  %v1820_v36 = vadd.f32 %v1788_v19, %v1546_v63 }
 0x1cf   : > { %v914_v29 = vpop.permute.xlu1 %913  ;;  %1209 = vrot.lane.b32.xlu0 %v1127_v38, %s3793_s20  ;;  %v4444_v37 = vadd.f32 %v4304_v5, %v1820_v36 }
 0x1d0   : > { %v967_v32 = vsel %vm963_vm1, %v912_v42, %v914_v29  ;;  %v1399_v29 = vmul.f32 %v4082_v7, %v4338_v26 }
 0x1d1   : > { %v1186_v2 = vpop.permute.xlu0 %1185  ;;  %1211 = vrot.lane.b32.xlu1 %v1128_v48, %s3793_s20  ;;  %v999_v51 = vadd.f32 %v967_v32, %v725_v45  ;;  %v1964_v47 = vmin.f32 %v4444_v37, 0.0  ;;  %v1404_v45 = vmul.f32 %v4094_v12, %v4390_v50  ;;  %vm1948_vm7 = vcmp.gt.f32.partialorder %v4444_v37, 0.0 }
 0x1d2   : > { %v3571_v62 = vpop.eup %3570 }
 0x1d3   : > { %v1188_v15 = vpop.permute.xlu1 %1187  ;;  %714 = vperm.xlu0 %3536, %v640_v57   ;;  %v3290_v17 = vadd.f32 -1.0, %v3571_v62  ;;  %v1982_v19 = vmul.f32 1.442695, %v1964_v47  ;;  %v1400_v57 = vmul.f32 %v4082_v7, %v4345_v52  ;;  %v4514_v47 = vpop.f32.mrf.mxu0 }
 0x1d4   : > { %v1241_v18 = vsel %vm1237_vm2, %v1186_v2, %v1188_v15 }
 0x1d5   : > { %v1460_v60 = vpop.permute.xlu0 %1459  ;;  %719 = vperm.xlu1 %3537, %v641_v28   ;;  %v2027_v55 = vsel %vm1947_vm6, %v1931_v59, %v3290_v17  ;;  %v1273_v5 = vadd.f32 %v1241_v18, %v999_v51  ;;  %v1132_v59 = vmul.f32 %v4076_v3, %v4410_v25  ;;  %3572 = vpow2.f32 %v1982_v19  ;;  %v1843_v17 = vld [vmem:[%s5272_s3 + $0x48] sm:$0xff] }
 0x1d6   : > { %v2042_v54 = vpack.c.bf16 %v2027_v55, %v2026_v61  ;;  %v1402_v28 = vmul.f32 %v4087_v9, %v4367_v49  ;;  %v1403_v9 = vmul.f32 %v4094_v12, %v4375_v58  ;;  %v1406_v18 = vmul.f32 %v4100_v16, %v4410_v25  ;;  %v1844_v12 = vld [vmem:[%s5272_s3 + $0x50] sm:$0xff] }
 0x1d7   : > { %v1462_v53 = vpop.permute.xlu1 %1461  ;;  %1213 = vrot.lane.b32.xlu0 %v1129_v0, %s3793_s20  ;;  %v1675_v19 = vmul.f32 %v4110_v27, %v4357_v13  ;;  %vm3797_vm6 = vmmov 0  }
 0x1d8   : > { %v1515_v22 = vsel %vm1511_vm3, %v1460_v60, %v1462_v53  ;;  %3398 = vmatprep.mubr.bf16.mxu1 %v2042_v54  ;;  %v1405_v60 = vmul.f32 %v4100_v16, %v4400_v41  ;;  %v1845_v53 = vld [vmem:[%s5272_s3 + $0x58] sm:$0xff] }
 0x1d9   : > { %v1734_v42 = vpop.permute.xlu0 %1733  ;;  %1215 = vrot.lane.b32.xlu1 %v1130_v8, %s3793_s20  ;;  %v1547_v1 = vadd.f32 %v1515_v22, %v1273_v5  ;;  %v1673_v5 = vmul.f32 %v4105_v23, %v4338_v26 }
 0x1db   : > { %v1736_v38 = vpop.permute.xlu1 %1735  ;;  %1217 = vrot.lane.b32.xlu0 %v1131_v56, %s3793_s20 }
 0x1dc   : > { %v1789_v21 = vsel %vm1785_vm4, %v1734_v42, %v1736_v38  ;;  %v1674_v38 = vmul.f32 %v4105_v23, %v4345_v52  ;;  %v1677_v52 = vmul.f32 %v4117_v31, %v4375_v58 }
 0x1dd   : > { %v1821_v48 = vadd.f32 %v1789_v21, %v1547_v1  ;;  %v4460_v63 = vpop.permute.xlu0 %915  ;;  %1219 = vrot.lane.b32.xlu1 %v1132_v59, %s3793_s20  ;;  %v4527_v21 = vpop.f32.mrf.mxu0 }
 0x1df   : > { %v1933_v3 = vadd.f32 %v4310_v24, %v1821_v48  ;;  %v4468_v36 = vpop.permute.xlu1 %917  ;;  %1479 = vrot.lane.b32.xlu0 %v1399_v29, %s3794_s21  ;;  %v1842_v24 = vld [vmem:[%s5272_s3 + $0x40] sm:$0xff]  ;;  %v4537_v29 = vpop.f32.mrf.mxu0 }
 0x1e1   : > { %v1965_v2 = vmin.f32 %v1933_v3, 0.0  ;;  %1481 = vrot.lane.b32.xlu1 %v1400_v57, %s3794_s21  ;;  %v4474_v62 = vpop.permute.xlu0 %1189  ;;  %vm1949_vm8 = vcmp.gt.f32.partialorder %v1933_v3, 0.0 }
 0x1e2   : > { %v3573_v61 = vpop.eup %3572 }
 0x1e3   : > { %v1984_v15 = vmul.f32 1.442695, %v1965_v2  ;;  %1483 = vrot.lane.b32.xlu0 %v1401_v4, %s3794_s21  ;;  %v4479_v7 = vpop.permute.xlu1 %1191  ;;  %v3291_v8 = vadd.f32 -1.0, %v3573_v61  ;;  %v4549_v2 = vpop.f32.mrf.mxu0 }
 0x1e5   : > { %3574 = vpow2.f32 %v1984_v15  ;;  %1485 = vrot.lane.b32.xlu1 %v1402_v28, %s3794_s21  ;;  %v4488_v32 = vpop.permute.xlu0 %919  ;;  %v2028_v42 = vsel %vm1948_vm7, %v4444_v37, %v3291_v8  ;;  %v1676_v37 = vmul.f32 %v4110_v27, %v4367_v49  ;;  %v1679_v49 = vmul.f32 %v4121_v35, %v4400_v41  ;;  %v4561_v15 = vpop.f32.mrf.mxu0 }
 0x1e6   : > { %v1680_v28 = vmul.f32 %v4121_v35, %v4410_v25  ;;  %v861_v25 = vmul.f32 %v4135_v40, %v4537_v29 }
 0x1e7   : > { %1892 = vperm.xlu0 %3536, %v1842_v24   ;;  %v4492_v0 = vpop.permute.xlu1 %921 }
 0x1e9   : > { %1897 = vperm.xlu1 %3537, %v1843_v17   ;;  %v4500_v55 = vpop.permute.xlu0 %1193  ;;  %v860_v17 = vmul.f32 %v4130_v39, %v4527_v21 }
 0x1eb   : > { %1487 = vrot.lane.b32.xlu0 %v1403_v9, %s3794_s21  ;;  %v4505_v54 = vpop.permute.xlu1 %1195  ;;  %v4573_v9 = vpop.f32.mrf.mxu0 }
 0x1ec   : > { %v864_v8 = vmul.f32 %v4142_v6, %v4573_v9 }
 0x1ed   : > { %1489 = vrot.lane.b32.xlu1 %v1404_v45, %s3794_s21  ;;  %v4516_v16 = vpop.permute.xlu0 %923  ;;  %v4583_v61 = vpop.f32.mrf.mxu0 }
 0x1ef   : > { %1491 = vrot.lane.b32.xlu0 %v1405_v60, %s3794_s21  ;;  %v4522_v59 = vpop.permute.xlu1 %925  ;;  %v862_v60 = vmul.f32 %v4135_v40, %v4549_v2  ;;  %v865_v40 = vmul.f32 %v4146_v10, %v4583_v61 }
 0x1f1   : > { %1493 = vrot.lane.b32.xlu1 %v1406_v18, %s3794_s21  ;;  %v4532_v48 = vpop.permute.xlu0 %927  ;;  %v863_v18 = vmul.f32 %v4142_v6, %v4561_v15  ;;  %v1133_v6 = vmul.f32 %v4153_v14, %v4514_v47 }
 0x1f2   : > { %v3575_v51 = vpop.eup %3574 }
 0x1f3   : > { %1902 = vperm.xlu0 %3536, %v1844_v12   ;;  %v3292_v22 = vadd.f32 -1.0, %v3575_v51  ;;  %v4539_v23 = vpop.permute.xlu1 %929  ;;  %v4591_v51 = vpop.f32.mrf.mxu0 }
 0x1f5   : > { %1907 = vperm.xlu1 %3537, %v1845_v53   ;;  %v2029_v56 = vsel %vm1949_vm8, %v1933_v3, %v3292_v22  ;;  %v1678_v3 = vmul.f32 %v4117_v31, %v4390_v50  ;;  %v859_v50 = vmul.f32 %v4130_v39, %v4514_v47 }
 0x1f6   : > { %v2043_v1 = vpack.c.bf16 %v2029_v56, %v2028_v42 }
 0x1f7   : > { %1753 = vrot.lane.b32.xlu0 %v1673_v5, %s3795_s22  ;;  %v866_v5 = vmul.f32 %v4146_v10, %v4591_v51  ;;  %v1135_v10 = vmul.f32 %v4159_v20, %v4537_v29 }
 0x1f8   : > { %3399 = vmatmul.mubr.bf16.vlgmr.msra.gmra.mxu1 %v2043_v1  ;;  %v1134_v1 = vmul.f32 %v4153_v14, %v4527_v21  ;;  %v968_v14 = vsel %vm963_vm1, %v4460_v63, %v4468_v36 }
 0x1f9   : > { %1755 = vrot.lane.b32.xlu1 %v1674_v38, %s3795_s22 }
 0x1fb   : > { %1757 = vrot.lane.b32.xlu0 %v1675_v19, %s3795_s22 }
 0x1fd   : > { %1759 = vrot.lane.b32.xlu1 %v1676_v37, %s3795_s22  ;;  %v1136_v37 = vmul.f32 %v4159_v20, %v4549_v2  ;;  %v1138_v20 = vmul.f32 %v4168_v30, %v4573_v9 }
 0x1fe   : > { %v4544_v57 = vpop.permute.xlu0 %694 }
 0x1ff   : > { %1761 = vrot.lane.b32.xlu0 %v1677_v52, %s3795_s22 }
 0x200   : > { %v4551_v27 = vpop.permute.xlu1 %699 }
 0x201   : > { %1763 = vrot.lane.b32.xlu1 %v1678_v3, %s3795_s22  ;;  %v1137_v3 = vmul.f32 %v4168_v30, %v4561_v15  ;;  %v1139_v30 = vmul.f32 %v4171_v34, %v4583_v61 }
 0x202   : > { %v4556_v4 = vpop.permute.xlu0 %1197 }
 0x203   : > { %1765 = vrot.lane.b32.xlu0 %v1679_v49, %s3795_s22  ;;  %v726_v49 = vmul.f32 %v4269_v46, %v4187_v11  ;;  %v5312_v46 = vld [vmem:[#allocation21_spill] sm:$0xff] }
 0x204   : > { %v4563_v31 = vpop.permute.xlu1 %1199 }
 0x205   : > { %1767 = vrot.lane.b32.xlu1 %v1680_v28, %s3795_s22  ;;  %v1000_v63 = vadd.f32 %v968_v14, %v726_v49  ;;  %v5315_v49 = vld [vmem:[#allocation14_spill] sm:$0xff] }
 0x206   : > { %v4568_v24 = vpop.permute.xlu0 %1201 }
 0x207   : > { %947 = vrot.lane.b32.xlu0 %v859_v50, %s3792_s17  ;;  %v1242_v50 = vsel %vm1237_vm2, %v4474_v62, %v4479_v7 }
 0x208   : > { %v4575_v35 = vpop.permute.xlu1 %1203  ;;  %v1274_v62 = vadd.f32 %v1242_v50, %v1000_v63 }
 0x209   : > { %949 = vrot.lane.b32.xlu1 %v860_v17, %s3792_s17  ;;  %v969_v17 = vsel %vm963_vm1, %v4488_v32, %v4492_v0 }
 0x20a   : > { %v1464_v45 = vpop.permute.xlu0 %1463 }
 0x20b   : > { %951 = vrot.lane.b32.xlu0 %v861_v25, %s3792_s17  ;;  %v727_v25 = vmul.f32 %v5312_v46, %v4205_v33  ;;  %v1846_v46 = vld [vmem:[%s5272_s3 + $0x60] sm:$0xff] }
 0x20c   : > { %v1466_v39 = vpop.permute.xlu1 %1465 }
 0x20d   : > { %953 = vrot.lane.b32.xlu1 %v862_v60, %s3792_s17  ;;  %v1516_v11 = vsel %vm1511_vm3, %v1464_v45, %v1466_v39  ;;  %v1140_v60 = vmul.f32 %v4171_v34, %v4591_v51  ;;  %v1001_v32 = vadd.f32 %v969_v17, %v727_v25  ;;  %v970_v39 = vsel %vm963_vm1, %v4516_v16, %v4522_v59  ;;  %v5313_v34 = vld [vmem:[#allocation13_spill] sm:$0xff] }
 0x20e   : > { %v1468_v12 = vpop.permute.xlu0 %1467  ;;  %v1548_v0 = vadd.f32 %v1516_v11, %v1274_v62  ;;  %v1244_v16 = vsel %vm1237_vm2, %v4556_v4, %v4563_v31  ;;  %v1409_v4 = vmul.f32 %v5315_v49, %v4537_v29  ;;  %v5316_v31 = vld [vmem:[#allocation23_spill] sm:$0xff] }
 0x20f   : > { %955 = vrot.lane.b32.xlu0 %v863_v18, %s3792_s17  ;;  %v1243_v18 = vsel %vm1237_vm2, %v4500_v55, %v4505_v54  ;;  %v5314_v55 = vld [vmem:[#allocation22_spill] sm:$0xff] }
 0x210   : > { %v1470_v53 = vpop.permute.xlu1 %1469  ;;  %v728_v54 = vmul.f32 %v5314_v55, %v4227_v44  ;;  %v971_v44 = vsel %vm963_vm1, %v4532_v48, %v4539_v23  ;;  %v1410_v48 = vmul.f32 %v5315_v49, %v4549_v2  ;;  %v1245_v23 = vsel %vm1237_vm2, %v4568_v24, %v4575_v35  ;;  %v5319_v49 = vld [vmem:[#allocation17_spill] sm:$0xff] }
 0x211   : > { %957 = vrot.lane.b32.xlu1 %v864_v8, %s3792_s17  ;;  %v1517_v33 = vsel %vm1511_vm3, %v1468_v12, %v1470_v53 }
 0x212   : > { %v1873_v22 = vpop.permute.xlu0 %1872  ;;  %v1002_v59 = vadd.f32 %v970_v39, %v728_v54 }
 0x213   : > { %959 = vrot.lane.b32.xlu0 %v865_v40, %s3792_s17  ;;  %v1407_v40 = vmul.f32 %v5313_v34, %v4514_v47 }
 0x214   : > { %v4599_v42 = vpop.permute.xlu1 %1877  ;;  %v1276_v50 = vadd.f32 %v1244_v16, %v1002_v59 }
 0x215   : > { %961 = vrot.lane.b32.xlu1 %v866_v5, %s3792_s17  ;;  %v1275_v5 = vadd.f32 %v1243_v18, %v1001_v32 }
 0x216   : > { %v1472_v56 = vpop.permute.xlu0 %1471 }
 0x217   : > { %1221 = vrot.lane.b32.xlu0 %v1133_v6, %s3793_s20  ;;  %v1549_v12 = vadd.f32 %v1517_v33, %v1275_v5  ;;  %v5318_v5 = vld [vmem:[#allocation16_spill] sm:$0xff] }
 0x218   : > { %v1474_v38 = vpop.permute.xlu1 %1473  ;;  %v1414_v16 = vmul.f32 %v5318_v5, %v4591_v51 }
 0x219   : > { %1223 = vrot.lane.b32.xlu1 %v1134_v1, %s3793_s20  ;;  %v1518_v14 = vsel %vm1511_vm3, %v1472_v56, %v1474_v38 }
 0x21a   : > { %v4610_v19 = vpop.permute.xlu0 %1475  ;;  %v1550_v38 = vadd.f32 %v1518_v14, %v1276_v50 }
 0x21b   : > { %1225 = vrot.lane.b32.xlu0 %v1135_v10, %s3793_s20  ;;  %v1408_v10 = vmul.f32 %v5313_v34, %v4527_v21 }
 0x21c   : > { %v1478_v52 = vpop.permute.xlu1 %1477 }
 0x21d   : > { %1227 = vrot.lane.b32.xlu1 %v1136_v37, %s3793_s20  ;;  %v1519_v25 = vsel %vm1511_vm3, %v4610_v19, %v1478_v52 }
 0x21e   : > { %v4623_v28 = vpop.permute.xlu0 %1882 }
 0x21f   : > { %1229 = vrot.lane.b32.xlu0 %v1137_v3, %s3793_s20 }
 0x220   : > { %v4631_v36 = vpop.permute.xlu1 %1887 }
 0x221   : > { %1231 = vrot.lane.b32.xlu1 %v1138_v20, %s3793_s20  ;;  %v729_v20 = vmul.f32 %v5316_v31, %v4249_v43 }
 0x222   : > { %v1738_v7 = vpop.permute.xlu0 %1737 }
 0x223   : > { %1233 = vrot.lane.b32.xlu0 %v1139_v30, %s3793_s20  ;;  %v1003_v56 = vadd.f32 %v971_v44, %v729_v20  ;;  %v1849_v44 = vld [vmem:[%s5272_s3 + $0x78] sm:$0xff] }
 0x224   : > { %v1740_v45 = vpop.permute.xlu1 %1739 }
 0x225   : > { %v1790_v8 = vsel %vm1785_vm4, %v1738_v7, %v1740_v45  ;;  %1235 = vrot.lane.b32.xlu1 %v1140_v60, %s3793_s20  ;;  %v1277_v24 = vadd.f32 %v1245_v23, %v1003_v56  ;;  %v5317_v45 = vld [vmem:[#allocation15_spill] sm:$0xff] }
 0x226   : > { %v1822_v6 = vadd.f32 %v1790_v8, %v1548_v0  ;;  %v1742_v1 = vpop.permute.xlu0 %1741  ;;  %v1411_v39 = vmul.f32 %v5317_v45, %v4561_v15 }
 0x227   : > { %1495 = vrot.lane.b32.xlu0 %v1407_v40, %s3794_s21  ;;  %v1551_v18 = vadd.f32 %v1519_v25, %v1277_v24  ;;  %v1412_v40 = vmul.f32 %v5317_v45, %v4573_v9 }
 0x228   : > { %v4664_v53 = vadd.f32 %v1873_v22, %v1822_v6  ;;  %v1744_v37 = vpop.permute.xlu1 %1743  ;;  %v1413_v6 = vmul.f32 %v5318_v5, %v4583_v61 }
 0x229   : > { %v1791_v3 = vsel %vm1785_vm4, %v1742_v1, %v1744_v37  ;;  %1497 = vrot.lane.b32.xlu1 %v1408_v10, %s3794_s21 }
 0x22a   : > { %v1966_v22 = vmin.f32 %v4664_v53, 0.0  ;;  %v1823_v63 = vadd.f32 %v1791_v3, %v1549_v12  ;;  %v1746_v17 = vpop.permute.xlu0 %1745  ;;  %vm1950_vm9 = vcmp.gt.f32.partialorder %v4664_v53, 0.0 }
 0x22b   : > { %1499 = vrot.lane.b32.xlu0 %v1409_v4, %s3794_s21  ;;  %v1681_v4 = vmul.f32 %v5319_v49, %v4514_v47 }
 0x22c   : > { %v1986_v11 = vmul.f32 1.442695, %v1966_v22  ;;  %v1935_v30 = vadd.f32 %v4599_v42, %v1823_v63  ;;  %v1748_v43 = vpop.permute.xlu1 %1747  ;;  %v1847_v42 = vld [vmem:[%s5272_s3 + $0x68] sm:$0xff]  ;;  %v1682_v22 = vmul.f32 %v5319_v49, %v4527_v21 }
 0x22d   : > { %v1792_v62 = vsel %vm1785_vm4, %v1746_v17, %v1748_v43  ;;  %1501 = vrot.lane.b32.xlu1 %v1410_v48, %s3794_s21  ;;  %v5320_v48 = vld [vmem:[#allocation18_spill] sm:$0xff] }
 0x22e   : > { %3576 = vpow2.f32 %v1986_v11  ;;  %v1967_v35 = vmin.f32 %v1935_v30, 0.0  ;;  %v1824_v7 = vadd.f32 %v1792_v62, %v1550_v38  ;;  %v1750_v60 = vpop.permute.xlu0 %1749  ;;  %v1683_v23 = vmul.f32 %v5320_v48, %v4537_v29  ;;  %v5321_v62 = vld [vmem:[#allocation19_spill] sm:$0xff] }
 0x22f   : > { %1912 = vperm.xlu0 %3536, %v1846_v46   ;;  %vm1951_vm10 = vcmp.gt.f32.partialorder %v1935_v30, 0.0  ;;  %v1684_v21 = vmul.f32 %v5320_v48, %v4549_v2  ;;  %v1685_v24 = vmul.f32 %v5321_v62, %v4561_v15 }
 0x230   : > { %v1988_v32 = vmul.f32 1.442695, %v1967_v35  ;;  %v4695_v0 = vadd.f32 %v4623_v28, %v1824_v7  ;;  %v1752_v19 = vpop.permute.xlu1 %1751 }
 0x231   : > { %v1793_v52 = vsel %vm1785_vm4, %v1750_v60, %v1752_v19  ;;  %1917 = vperm.xlu1 %3537, %v1847_v42   ;;  %v5322_v42 = vld [vmem:[#allocation20_spill] sm:$0xff] }
 0x232   : > { %3578 = vpow2.f32 %v1988_v32  ;;  %v1968_v33 = vmin.f32 %v4695_v0, 0.0  ;;  %v1825_v8 = vadd.f32 %v1793_v52, %v1551_v18  ;;  %v4701_v34 = vpop.permute.xlu0 %931  ;;  %v1687_v18 = vmul.f32 %v5322_v42, %v4583_v61 }
 0x233   : > { %1503 = vrot.lane.b32.xlu0 %v1411_v39, %s3794_s21  ;;  %vm1952_vm11 = vcmp.gt.f32.partialorder %v4695_v0, 0.0 }
 0x234   : > { %v1990_v28 = vmul.f32 1.442695, %v1968_v33  ;;  %v1937_v55 = vadd.f32 %v4631_v36, %v1825_v8  ;;  %v4707_v54 = vpop.permute.xlu1 %933  ;;  %v1848_v36 = vld [vmem:[%s5272_s3 + $0x70] sm:$0xff] }
 0x235   : > { %1505 = vrot.lane.b32.xlu1 %v1412_v40, %s3794_s21  ;;  %v2338_v33 = vld [vmem:[#allocation6 + $0xf0] sm:$0xff]  ;;  %v2339_v40 = vld [vmem:[#allocation6 + $0xf8] sm:$0xff] }
 0x236   : > { %3580 = vpow2.f32 %v1990_v28  ;;  %v1969_v1 = vmin.f32 %v1937_v55, 0.0  ;;  %v4712_v10 = vpop.permute.xlu0 %935  ;;  %vm1953_vm12 = vcmp.gt.f32.partialorder %v1937_v55, 0.0 }
 0x237   : > { %1507 = vrot.lane.b32.xlu0 %v1413_v6, %s3794_s21  ;;  %v2336_v6 = vld [vmem:[#allocation6 + $0xe0] sm:$0xff] }
 0x238   : > { %v1992_v59 = vmul.f32 1.442695, %v1969_v1  ;;  %v4717_v12 = vpop.permute.xlu1 %937 }
 0x239   : > { %1509 = vrot.lane.b32.xlu1 %v1414_v16, %s3794_s21  ;;  %v2337_v16 = vld [vmem:[#allocation6 + $0xe8] sm:$0xff] }
 0x23a   : > { %3582 = vpow2.f32 %v1992_v59  ;;  %v4723_v37 = vpop.permute.xlu0 %939 }
 0x23b   : > { %v3577_v14 = vpop.eup %3576  ;;  %1922 = vperm.xlu0 %3536, %v1848_v36   ;;  %v2529_v36 = vld [vmem:[#allocation6 + $0x160] sm:$0xff] }
 0x23c   : > { %v4728_v3 = vpop.permute.xlu1 %941  ;;  %v3293_v20 = vadd.f32 -1.0, %v3577_v14  ;;  %v2530_v14 = vld [vmem:[#allocation6 + $0x168] sm:$0xff] }
 0x23d   : > { %1927 = vperm.xlu1 %3537, %v1849_v44  }
 0x23e   : > { %v4732_v31 = vpop.permute.xlu0 %943  ;;  %v2030_v38 = vsel %vm1950_vm9, %v4664_v53, %v3293_v20 }
 0x23f   : > { %v3579_v50 = vpop.eup %3578  ;;  %1769 = vrot.lane.b32.xlu0 %v1681_v4, %s3795_s22  ;;  %v2334_v4 = vld [vmem:[#allocation6 + $0xd0] sm:$0xff] }
 0x240   : > { %v4737_v63 = vpop.permute.xlu1 %945  ;;  %v3294_v17 = vadd.f32 -1.0, %v3579_v50  ;;  %v2335_v50 = vld [vmem:[#allocation6 + $0xd8] sm:$0xff] }
 0x241   : > { %1771 = vrot.lane.b32.xlu1 %v1682_v22, %s3795_s22 }
 0x242   : > { %v4743_v56 = vpop.permute.xlu0 %704  ;;  %v2031_v11 = vsel %vm1951_vm10, %v1935_v30, %v3294_v17  ;;  %v1686_v30 = vmul.f32 %v5321_v62, %v4573_v9  ;;  %v1688_v9 = vmul.f32 %v5322_v42, %v4591_v51  ;;  %v2532_v51 = vld [vmem:[#allocation6 + $0x178] sm:$0xff]  ;;  %v2527_v17 = vld [vmem:[#allocation6 + $0x150] sm:$0xff]  ;;  %v2525_v62 = vld [vmem:[#allocation6 + $0x140] sm:$0xff] }
 0x243   : > { %v3581_v43 = vpop.eup %3580  ;;  %1773 = vrot.lane.b32.xlu0 %v1683_v23, %s3795_s22  ;;  %v2044_v46 = vpack.c.bf16 %v2031_v11, %v2030_v38  ;;  %v2528_v23 = vld [vmem:[#allocation6 + $0x158] sm:$0xff]  ;;  %v2332_v11 = vld [vmem:[#allocation6 + $0xc0] sm:$0xff] }
 0x244   : > { %v4749_v25 = vpop.permute.xlu1 %709  ;;  %v3295_v7 = vadd.f32 -1.0, %v3581_v43  ;;  %v5323_v42 = vld [vmem:[#allocation24_spill] sm:$0xff] }
 0x245   : > { %3402 = vmatprep.mubr.bf16.mxu1 %v2044_v46  ;;  %1775 = vrot.lane.b32.xlu1 %v1684_v21, %s3795_s22  ;;  %v2333_v21 = vld [vmem:[#allocation6 + $0xc8] sm:$0xff] }
 0x246   : > { %v4754_v35 = vpop.permute.xlu0 %1205  ;;  %v2032_v19 = vsel %vm1952_vm11, %v4695_v0, %v3295_v7  ;;  %v2531_v0 = vld [vmem:[#allocation6 + $0x170] sm:$0xff]  ;;  %v2526_v7 = vld [vmem:[#allocation6 + $0x148] sm:$0xff] }
 0x247   : > { %v3583_v53 = vpop.eup %3582  ;;  %1777 = vrot.lane.b32.xlu0 %v1685_v24, %s3795_s22 }
 0x248   : > { %v4759_v2 = vpop.permute.xlu1 %1207  ;;  %v3296_v60 = vadd.f32 -1.0, %v3583_v53 }
 0x249   : > { %1779 = vrot.lane.b32.xlu1 %v1686_v30, %s3795_s22  ;;  %v2330_v30 = vld [vmem:[#allocation6 + $0xb0] sm:$0xff] }
 0x24a   : > { %v4765_v32 = vpop.permute.xlu0 %1209  ;;  %v2033_v52 = vsel %vm1953_vm12, %v1937_v55, %v3296_v60  ;;  %v972_v60 = vsel %vm963_vm1, %v4701_v34, %v4707_v54  ;;  %v973_v34 = vsel %vm963_vm1, %v4712_v10, %v4717_v12  ;;  %v974_v10 = vsel %vm963_vm1, %v4723_v37, %v4728_v3 }
 0x24b   : > { %1781 = vrot.lane.b32.xlu0 %v1687_v18, %s3795_s22  ;;  %v2045_v45 = vpack.c.bf16 %v2033_v52, %v2032_v19  ;;  %v730_v18 = vmul.f32 %v5323_v42, %v4338_v26  ;;  %v2331_v52 = vld [vmem:[#allocation6 + $0xb8] sm:$0xff]  ;;  %v5324_v26 = vld [vmem:[#allocation25_spill] sm:$0xff]  ;;  %v2326_v42 = vld [vmem:[#allocation6 + $0x90] sm:$0xff] }
 0x24c   : > { %v4771_v39 = vpop.permute.xlu1 %1211 }
 0x24d   : > { %3403 = vmatmul.mubr.bf16.gmra.mxu1 %v2045_v45  ;;  %1783 = vrot.lane.b32.xlu1 %v1688_v9, %s3795_s22  ;;  %v1246_v9 = vsel %vm1237_vm2, %v4754_v35, %v4759_v2  ;;  %v1004_v45 = vadd.f32 %v972_v60, %v730_v18  ;;  %v1247_v35 = vsel %vm1237_vm2, %v4765_v32, %v4771_v39  ;;  %v2329_v39 = vld [vmem:[#allocation6 + $0xa8] sm:$0xff] }
 0x24e   : > { %v4774_v8 = vpop.permute.xlu0 %714 }
 0x24f   : > { %2412 = vperm.xlu0 %3536, %v2338_v33  }
 0x250   : > { %v4776_v28 = vpop.permute.xlu1 %719 }
 0x251   : > { %2417 = vperm.xlu1 %3537, %v2339_v40   ;;  %v2523_v40 = vld [vmem:[#allocation6 + $0x130] sm:$0xff] }
 0x252   : > { %v4778_v55 = vpop.permute.xlu0 %1213 }
 0x253   : > { %2605 = vperm.xlu0 %3536, %v2531_v0   ;;  %v731_v0 = vmul.f32 %v5324_v26, %v4357_v13 }
 0x254   : > { %v4780_v5 = vpop.permute.xlu1 %1215 }
 0x255   : > { %2610 = vperm.xlu1 %3537, %v2532_v51   ;;  %v1278_v51 = vadd.f32 %v1246_v9, %v1004_v45  ;;  %v1005_v2 = vadd.f32 %v973_v34, %v731_v0 }
 0x256   : > { %v4782_v1 = vpop.permute.xlu0 %1217 }
 0x257   : > { %2402 = vperm.xlu0 %3536, %v2336_v6  }
 0x258   : > { %v4784_v59 = vpop.permute.xlu1 %1219 }
 0x259   : > { %2407 = vperm.xlu1 %3537, %v2337_v16   ;;  %v2524_v16 = vld [vmem:[#allocation6 + $0x138] sm:$0xff] }
 0x25a   : > { %v1480_v44 = vpop.permute.xlu0 %1479 }
 0x25b   : > { %2595 = vperm.xlu0 %3536, %v2529_v36  }
 0x25c   : > { %v1482_v49 = vpop.permute.xlu1 %1481 }
 0x25d   : > { %2600 = vperm.xlu1 %3537, %v2530_v14   ;;  %v1520_v54 = vsel %vm1511_vm3, %v1480_v44, %v1482_v49  ;;  %v732_v44 = vmul.f32 %v4544_v57, %v4375_v58  ;;  %v1279_v49 = vadd.f32 %v1247_v35, %v1005_v2 }
 0x25e   : > { %v1484_v20 = vpop.permute.xlu0 %1483  ;;  %v1552_v36 = vadd.f32 %v1520_v54, %v1278_v51  ;;  %v2519_v54 = vld [vmem:[#allocation6 + $0x110] sm:$0xff]  ;;  %v2520_v51 = vld [vmem:[#allocation6 + $0x118] sm:$0xff] }
 0x25f   : > { %2392 = vperm.xlu0 %3536, %v2334_v4   ;;  %v2328_v4 = vld [vmem:[#allocation6 + $0xa0] sm:$0xff] }
 0x260   : > { %v1486_v22 = vpop.permute.xlu1 %1485 }
 0x261   : > { %2397 = vperm.xlu1 %3537, %v2335_v50   ;;  %v1521_v12 = vsel %vm1511_vm3, %v1484_v20, %v1486_v22  ;;  %v2521_v20 = vld [vmem:[#allocation6 + $0x120] sm:$0xff]  ;;  %v975_v22 = vsel %vm963_vm1, %v4732_v31, %v4737_v63 }
 0x262   : > { %v1893_v48 = vpop.permute.xlu0 %1892 }
 0x263   : > { %2585 = vperm.xlu0 %3536, %v2527_v17   ;;  %v1248_v17 = vsel %vm1237_vm2, %v4778_v55, %v4780_v5 }
 0x264   : > { %v4786_v38 = vpop.permute.xlu1 %1897 }
 0x265   : > { %2590 = vperm.xlu1 %3537, %v2528_v23   ;;  %v1006_v23 = vadd.f32 %v974_v10, %v732_v44  ;;  %v2518_v44 = vld [vmem:[#allocation6 + $0x108] sm:$0xff] }
 0x266   : > { %v1488_v43 = vpop.permute.xlu0 %1487 }
 0x267   : > { %2382 = vperm.xlu0 %3536, %v2332_v11   ;;  %v1553_v11 = vadd.f32 %v1521_v12, %v1279_v49  ;;  %v1280_v55 = vadd.f32 %v1248_v17, %v1006_v23  ;;  %v2517_v12 = vld [vmem:[#allocation6 + $0x100] sm:$0xff] }
 0x268   : > { %v1490_v46 = vpop.permute.xlu1 %1489 }
 0x269   : > { %2387 = vperm.xlu1 %3537, %v2333_v21   ;;  %v1522_v58 = vsel %vm1511_vm3, %v1488_v43, %v1490_v46  ;;  %v733_v21 = vmul.f32 %v4551_v27, %v4400_v41 }
 0x26a   : > { %v4788_v24 = vpop.permute.xlu0 %1491  ;;  %v1554_v63 = vadd.f32 %v1522_v58, %v1280_v55 }
 0x26b   : > { %2575 = vperm.xlu0 %3536, %v2525_v62   ;;  %v1007_v31 = vadd.f32 %v975_v22, %v733_v21  ;;  %v2224_v21 = vld [vmem:[#allocation6 + $0x68] sm:$0xff] }
 0x26c   : > { %v1494_v53 = vpop.permute.xlu1 %1493 }
 0x26d   : > { %2580 = vperm.xlu1 %3537, %v2526_v7   ;;  %v2522_v7 = vld [vmem:[#allocation6 + $0x128] sm:$0xff]  ;;  %v1523_v41 = vsel %vm1511_vm3, %v4788_v24, %v1494_v53 }
 0x26e   : > { %v4795_v19 = vpop.permute.xlu0 %1902 }
 0x26f   : > { %2372 = vperm.xlu0 %3536, %v2330_v30   ;;  %v1249_v30 = vsel %vm1237_vm2, %v4782_v1, %v4784_v59  ;;  %v2327_v1 = vld [vmem:[#allocation6 + $0x98] sm:$0xff] }
 0x270   : > { %v4800_v33 = vpop.permute.xlu1 %1907  ;;  %v1281_v18 = vadd.f32 %v1249_v30, %v1007_v31  ;;  %v2222_v30 = vld [vmem:[#allocation6 + $0x58] sm:$0xff] }
 0x271   : > { %2377 = vperm.xlu1 %3537, %v2331_v52  }
 0x272   : > { %v1754_v6 = vpop.permute.xlu0 %1753  ;;  %v1555_v59 = vadd.f32 %v1523_v41, %v1281_v18 }
 0x273   : > { %2565 = vperm.xlu0 %3536, %v2523_v40  }
 0x274   : > { %v1756_v14 = vpop.permute.xlu1 %1755 }
 0x275   : > { %v1794_v13 = vsel %vm1785_vm4, %v1754_v6, %v1756_v14  ;;  %2570 = vperm.xlu1 %3537, %v2524_v16   ;;  %v2325_v14 = vld [vmem:[#allocation6 + $0x88] sm:$0xff] }
 0x276   : > { %v1826_v50 = vadd.f32 %v1794_v13, %v1552_v36  ;;  %v1758_v32 = vpop.permute.xlu0 %1757 }
 0x277   : > { %2362 = vperm.xlu0 %3536, %v2328_v4  }
 0x278   : > { %v4821_v37 = vadd.f32 %v1893_v48, %v1826_v50  ;;  %v1760_v3 = vpop.permute.xlu1 %1759  ;;  %v2225_v50 = vld [vmem:[#allocation6 + $0x70] sm:$0xff] }
 0x279   : > { %v1795_v57 = vsel %vm1785_vm4, %v1758_v32, %v1760_v3  ;;  %2367 = vperm.xlu1 %3537, %v2329_v39   ;;  %v2226_v39 = vld [vmem:[#allocation6 + $0x78] sm:$0xff]  ;;  %v2223_v3 = vld [vmem:[#allocation6 + $0x60] sm:$0xff] }
 0x27a   : > { %v1970_v5 = vmin.f32 %v4821_v37, 0.0  ;;  %v1827_v62 = vadd.f32 %v1795_v57, %v1553_v11  ;;  %v1762_v48 = vpop.permute.xlu0 %1761  ;;  %vm1954_vm13 = vcmp.gt.f32.partialorder %v4821_v37, 0.0 }
 0x27b   : > { %2555 = vperm.xlu0 %3536, %v2521_v20  }
 0x27c   : > { %v1994_v43 = vmul.f32 1.442695, %v1970_v5  ;;  %v1939_v46 = vadd.f32 %v4786_v38, %v1827_v62  ;;  %v1764_v60 = vpop.permute.xlu1 %1763 }
 0x27d   : > { %v1796_v27 = vsel %vm1785_vm4, %v1762_v48, %v1764_v60  ;;  %2560 = vperm.xlu1 %3537, %v2522_v7   ;;  %v2221_v48 = vld [vmem:[#allocation6 + $0x50] sm:$0xff]  ;;  %v2219_v60 = vld [vmem:[#allocation6 + $0x40] sm:$0xff] }
 0x27e   : > { %3584 = vpow2.f32 %v1994_v43  ;;  %v1971_v52 = vmin.f32 %v1939_v46, 0.0  ;;  %v1828_v9 = vadd.f32 %v1796_v27, %v1554_v63  ;;  %v1766_v45 = vpop.permute.xlu0 %1765  ;;  %vm1955_vm14 = vcmp.gt.f32.partialorder %v1939_v46, 0.0  ;;  %v2220_v27 = vld [vmem:[#allocation6 + $0x48] sm:$0xff] }
 0x27f   : > { %2352 = vperm.xlu0 %3536, %v2326_v42  }
 0x280   : > { %v1996_v40 = vmul.f32 1.442695, %v1971_v52  ;;  %v4839_v34 = vadd.f32 %v4795_v19, %v1828_v9  ;;  %v1768_v38 = vpop.permute.xlu1 %1767  ;;  %v2324_v19 = vld [vmem:[#allocation6 + $0x80] sm:$0xff]  ;;  %v2217_v9 = vld [vmem:[#allocation6 + $0x30] sm:$0xff] }
 0x281   : > { %v1797_v26 = vsel %vm1785_vm4, %v1766_v45, %v1768_v38  ;;  %2357 = vperm.xlu1 %3537, %v2327_v1   ;;  %v2218_v1 = vld [vmem:[#allocation6 + $0x38] sm:$0xff] }
 0x282   : > { %3586 = vpow2.f32 %v1996_v40  ;;  %v1972_v24 = vmin.f32 %v4839_v34, 0.0  ;;  %v1829_v53 = vadd.f32 %v1797_v26, %v1555_v59  ;;  %v4843_v0 = vpop.permute.xlu0 %947  ;;  %vm1956_vm15 = vcmp.gt.f32.partialorder %v4839_v34, 0.0  ;;  %v2215_v40 = vld [vmem:[#allocation6 + $0x20] sm:$0xff] }
 0x283   : > { %2545 = vperm.xlu0 %3536, %v2519_v54   ;;  %v2216_v54 = vld [vmem:[#allocation6 + $0x28] sm:$0xff] }
 0x284   : > { %v1998_v6 = vmul.f32 1.442695, %v1972_v24  ;;  %v1941_v16 = vadd.f32 %v4800_v33, %v1829_v53  ;;  %v4846_v35 = vpop.permute.xlu1 %949  ;;  %v2213_v24 = vld [vmem:[#allocation6 + $0x10] sm:$0xff]  ;;  %v2214_v53 = vld [vmem:[#allocation6 + $0x18] sm:$0xff] }
 0x285   : > { %2550 = vperm.xlu1 %3537, %v2520_v51  }
 0x286   : > { %3588 = vpow2.f32 %v1998_v6  ;;  %v1973_v2 = vmin.f32 %v1941_v16, 0.0  ;;  %v4848_v36 = vpop.permute.xlu0 %951  ;;  %vm1957_vm5 = vcmp.gt.f32.partialorder %v1941_v16, 0.0 }
 0x287   : > { %2342 = vperm.xlu0 %3536, %v2324_v19  }
 0x288   : > { %v2000_v4 = vmul.f32 1.442695, %v1973_v2  ;;  %v4850_v10 = vpop.permute.xlu1 %953 }
 0x289   : > { %2347 = vperm.xlu1 %3537, %v2325_v14  }
 0x28a   : > { %3590 = vpow2.f32 %v2000_v4  ;;  %v4852_v13 = vpop.permute.xlu0 %955 }
 0x28b   : > { %v3585_v33 = vpop.eup %3584  ;;  %2535 = vperm.xlu0 %3536, %v2517_v12   ;;  %v976_v12 = vsel %vm963_vm1, %v4843_v0, %v4846_v35 }
 0x28c   : > { %v4854_v49 = vpop.permute.xlu1 %957  ;;  %v3297_v17 = vadd.f32 -1.0, %v3585_v33 }
 0x28d   : > { %2540 = vperm.xlu1 %3537, %v2518_v44   ;;  %v734_v44 = vmul.f32 %v4743_v56, %v4514_v47 }
 0x28e   : > { %v4856_v32 = vpop.permute.xlu0 %959  ;;  %v2034_v58 = vsel %vm1954_vm13, %v4821_v37, %v3297_v17 }
 0x28f   : > { %v3587_v23 = vpop.eup %3586  ;;  %2299 = vperm.xlu0 %3536, %v2225_v50  }
 0x290   : > { %v4858_v11 = vpop.permute.xlu1 %961  ;;  %v3298_v20 = vadd.f32 -1.0, %v3587_v23  ;;  %v977_v23 = vsel %vm963_vm1, %v4848_v36, %v4850_v10  ;;  %v736_v10 = vmul.f32 %v4774_v8, %v4561_v15  ;;  %v737_v15 = vmul.f32 %v4776_v28, %v4583_v61 }
 0x291   : > { %2304 = vperm.xlu1 %3537, %v2226_v39   ;;  %v1008_v39 = vadd.f32 %v976_v12, %v734_v44 }
 0x292   : > { %v1222_v22 = vpop.permute.xlu0 %1221  ;;  %v2035_v57 = vsel %vm1955_vm14, %v1939_v46, %v3298_v20  ;;  %v735_v20 = vmul.f32 %v4749_v25, %v4537_v29 }
 0x293   : > { %v3589_v55 = vpop.eup %3588  ;;  %2289 = vperm.xlu0 %3536, %v2223_v3   ;;  %v2046_v5 = vpack.c.bf16 %v2035_v57, %v2034_v58 }
 0x294   : > { %v1224_v62 = vpop.permute.xlu1 %1223  ;;  %v3299_v31 = vadd.f32 -1.0, %v3589_v55  ;;  %v1009_v35 = vadd.f32 %v977_v23, %v735_v20 }
 0x295   : > { %3406 = vmatprep.mubr.bf16.mxu1 %v2046_v5  ;;  %2294 = vperm.xlu1 %3537, %v2224_v21   ;;  %v1250_v50 = vsel %vm1237_vm2, %v1222_v22, %v1224_v62  ;;  %v978_v22 = vsel %vm963_vm1, %v4852_v13, %v4854_v49  ;;  %v979_v13 = vsel %vm963_vm1, %v4856_v32, %v4858_v11 }
 0x296   : > { %v1226_v7 = vpop.permute.xlu0 %1225  ;;  %v2036_v46 = vsel %vm1956_vm15, %v4839_v34, %v3299_v31  ;;  %v1282_v58 = vadd.f32 %v1250_v50, %v1008_v39  ;;  %v1010_v62 = vadd.f32 %v978_v22, %v736_v10 }
 0x297   : > { %v3591_v63 = vpop.eup %3590  ;;  %2279 = vperm.xlu0 %3536, %v2221_v48  }
 0x298   : > { %v1228_v43 = vpop.permute.xlu1 %1227  ;;  %v3300_v42 = vadd.f32 -1.0, %v3591_v63 }
 0x299   : > { %2284 = vperm.xlu1 %3537, %v2222_v30   ;;  %v1251_v0 = vsel %vm1237_vm2, %v1226_v7, %v1228_v43 }
 0x29a   : > { %v1230_v37 = vpop.permute.xlu0 %1229  ;;  %v2037_v41 = vsel %vm1957_vm5, %v1941_v16, %v3300_v42  ;;  %v1283_v55 = vadd.f32 %v1251_v0, %v1009_v35 }
 0x29b   : > { %2269 = vperm.xlu0 %3536, %v2219_v60   ;;  %v2047_v18 = vpack.c.bf16 %v2037_v41, %v2036_v46 }
 0x29c   : > { %v1232_v52 = vpop.permute.xlu1 %1231 }
 0x29d   : > { %3407 = vmatmul.mubr.bf16.gmra.mxu1 %v2047_v18  ;;  %2274 = vperm.xlu1 %3537, %v2220_v27   ;;  %v1252_v5 = vsel %vm1237_vm2, %v1230_v37, %v1232_v52  ;;  %v1011_v37 = vadd.f32 %v979_v13, %v737_v15 }
 0x29e   : > { %v1234_v45 = vpop.permute.xlu0 %1233  ;;  %v1284_v8 = vadd.f32 %v1252_v5, %v1010_v62 }
 0x29f   : > { %2259 = vperm.xlu0 %3536, %v2217_v9  }
 0x2a0   : > { %v1236_v59 = vpop.permute.xlu1 %1235 }
 0x2a1   : > { %2264 = vperm.xlu1 %3537, %v2218_v1   ;;  %v1253_v42 = vsel %vm1237_vm2, %v1234_v45, %v1236_v59 }
 0x2a2   : > { %v1496_v38 = vpop.permute.xlu0 %1495  ;;  %v1285_v52 = vadd.f32 %v1253_v42, %v1011_v37 }
 0x2a3   : > { %2249 = vperm.xlu0 %3536, %v2215_v40  }
 0x2a4   : > { %v1498_v26 = vpop.permute.xlu1 %1497 }
 0x2a5   : > { %2254 = vperm.xlu1 %3537, %v2216_v54   ;;  %v1524_v3 = vsel %vm1511_vm3, %v1496_v38, %v1498_v26 }
 0x2a6   : > { %v1500_v34 = vpop.permute.xlu0 %1499  ;;  %v1556_v47 = vadd.f32 %v1524_v3, %v1282_v58 }
 0x2a7   : > { %2239 = vperm.xlu0 %3536, %v2213_v24  }
 0x2a8   : > { %v1502_v51 = vpop.permute.xlu1 %1501 }
 0x2a9   : > { %2244 = vperm.xlu1 %3537, %v2214_v53   ;;  %v1525_v21 = vsel %vm1511_vm3, %v1500_v34, %v1502_v51 }
 0x2aa   : > { %v1913_v6 = vpop.permute.xlu0 %1912  ;;  %v1557_v48 = vadd.f32 %v1525_v21, %v1283_v55 }
 0x2ac   : > { %v1918_v16 = vpop.permute.xlu1 %1917 }
 0x2ae   : > { %v1504_v19 = vpop.permute.xlu0 %1503 }
 0x2b0   : > { %v1506_v2 = vpop.permute.xlu1 %1505 }
 0x2b1   : > { %v1526_v49 = vsel %vm1511_vm3, %v1504_v19, %v1506_v2 }
 0x2b2   : > { %v1508_v14 = vpop.permute.xlu0 %1507  ;;  %v1558_v46 = vadd.f32 %v1526_v49, %v1284_v8 }
 0x2b4   : > { %v1510_v4 = vpop.permute.xlu1 %1509 }
 0x2b5   : > { %v1527_v32 = vsel %vm1511_vm3, %v1508_v14, %v1510_v4 }
 0x2b6   : > { %v1923_v33 = vpop.permute.xlu0 %1922  ;;  %v1559_v61 = vadd.f32 %v1527_v32, %v1285_v52 }
 0x2b8   : > { %v1928_v17 = vpop.permute.xlu1 %1927 }
 0x2ba   : > { %v1770_v57 = vpop.permute.xlu0 %1769 }
 0x2bc   : > { %v1772_v56 = vpop.permute.xlu1 %1771 }
 0x2bd   : > { %v1798_v36 = vsel %vm1785_vm4, %v1770_v57, %v1772_v56 }
 0x2be   : > { %v1830_v29 = vadd.f32 %v1798_v36, %v1556_v47  ;;  %v1774_v25 = vpop.permute.xlu0 %1773 }
 0x2c0   : > { %v1942_v7 = vadd.f32 %v1913_v6, %v1830_v29  ;;  %v1776_v30 = vpop.permute.xlu1 %1775 }
 0x2c1   : > { %v1799_v31 = vsel %vm1785_vm4, %v1774_v25, %v1776_v30  ;;  %v4912_v25 = vpop.f32.mrf.mxu1 }
 0x2c2   : > { %v1974_v63 = vmin.f32 %v1942_v7, 0.0  ;;  %v1831_v43 = vadd.f32 %v1799_v31, %v1557_v48  ;;  %v1778_v60 = vpop.permute.xlu0 %1777  ;;  %vm1958_vm1 = vcmp.gt.f32.partialorder %v1942_v7, 0.0 }
 0x2c3   : > { %v4914_v62 = vpop.f32.mrf.mxu1 }
 0x2c4   : > { %v2002_v41 = vmul.f32 1.442695, %v1974_v63  ;;  %v1943_v27 = vadd.f32 %v1918_v16, %v1831_v43  ;;  %v1780_v18 = vpop.permute.xlu1 %1779 }
 0x2c5   : > { %v1800_v11 = vsel %vm1785_vm4, %v1778_v60, %v1780_v18 }
 0x2c6   : > { %3592 = vpow2.f32 %v2002_v41  ;;  %v1975_v9 = vmin.f32 %v1943_v27, 0.0  ;;  %v1832_v1 = vadd.f32 %v1800_v11, %v1558_v46  ;;  %v1782_v38 = vpop.permute.xlu0 %1781  ;;  %vm1959_vm2 = vcmp.gt.f32.partialorder %v1943_v27, 0.0 }
 0x2c8   : > { %v2004_v28 = vmul.f32 1.442695, %v1975_v9  ;;  %v1944_v40 = vadd.f32 %v1923_v33, %v1832_v1  ;;  %v1784_v54 = vpop.permute.xlu1 %1783 }
 0x2c9   : > { %v1801_v45 = vsel %vm1785_vm4, %v1782_v38, %v1784_v54 }
 0x2ca   : > { %3594 = vpow2.f32 %v2004_v28  ;;  %v1976_v59 = vmin.f32 %v1944_v40, 0.0  ;;  %v1833_v26 = vadd.f32 %v1801_v45, %v1559_v61  ;;  %v4896_v14 = vpop.permute.xlu0 %2412  ;;  %vm1960_vm3 = vcmp.gt.f32.partialorder %v1944_v40, 0.0 }
 0x2cc   : > { %v2006_v24 = vmul.f32 1.442695, %v1976_v59  ;;  %v1945_v34 = vadd.f32 %v1928_v17, %v1833_v26  ;;  %v4898_v50 = vpop.permute.xlu1 %2417 }
 0x2ce   : > { %3596 = vpow2.f32 %v2006_v24  ;;  %v1977_v53 = vmin.f32 %v1945_v34, 0.0  ;;  %v4900_v23 = vpop.permute.xlu0 %2605  ;;  %vm1961_vm4 = vcmp.gt.f32.partialorder %v1945_v34, 0.0 }
 0x2d0   : > { %v2008_v51 = vmul.f32 1.442695, %v1977_v53  ;;  %v4902_v57 = vpop.permute.xlu1 %2610 }
 0x2d2   : > { %3598 = vpow2.f32 %v2008_v51  ;;  %v4904_v35 = vpop.permute.xlu0 %2402 }
 0x2d3   : > { %v3593_v6 = vpop.eup %3592 }
 0x2d4   : > { %v3301_v16 = vadd.f32 -1.0, %v3593_v6  ;;  %v4906_v47 = vpop.permute.xlu1 %2407 }
 0x2d6   : > { %v2038_v4 = vsel %vm1958_vm1, %v1942_v7, %v3301_v16  ;;  %v4908_v56 = vpop.permute.xlu0 %2595  ;;  %v4916_v7 = vpop.f32.mrf.mxu1 }
 0x2d7   : > { %v3595_v19 = vpop.eup %3594 }
 0x2d8   : > { %v3302_v2 = vadd.f32 -1.0, %v3595_v19  ;;  %v4910_v22 = vpop.permute.xlu1 %2600  ;;  %v4918_v49 = vpop.f32.mrf.mxu1 }
 0x2da   : > { %v2039_v12 = vsel %vm1959_vm2, %v1943_v27, %v3302_v2  ;;  %v2393_v21 = vpop.permute.xlu0 %2392 }
 0x2db   : > { %v3597_v44 = vpop.eup %3596  ;;  %v2048_v33 = vpack.c.bf16 %v2039_v12, %v2038_v4 }
 0x2dc   : > { %v3303_v39 = vadd.f32 -1.0, %v3597_v44  ;;  %v2398_v36 = vpop.permute.xlu1 %2397 }
 0x2dd   : > { %3410 = vmatprep.mubr.bf16.mxu1 %v2048_v33 }
 0x2de   : > { %v2040_v20 = vsel %vm1960_vm3, %v1944_v40, %v3303_v39  ;;  %v2586_v10 = vpop.permute.xlu0 %2585 }
 0x2df   : > { %v3599_v17 = vpop.eup %3598 }
 0x2e0   : > { %v3304_v3 = vadd.f32 -1.0, %v3599_v17  ;;  %v2591_v55 = vpop.permute.xlu1 %2590 }
 0x2e2   : > { %v2041_v58 = vsel %vm1961_vm4, %v1945_v34, %v3304_v3  ;;  %v2383_v29 = vpop.permute.xlu0 %2382 }
 0x2e3   : > { %v2049_v0 = vpack.c.bf16 %v2041_v58, %v2040_v20 }
 0x2e4   : > { %v2388_v5 = vpop.permute.xlu1 %2387 }
 0x2e5   : > { %3411 = vmatmul.mubr.bf16.gmra.mxu1 %v2049_v0 }
 0x2e6   : > { %v2576_v48 = vpop.permute.xlu0 %2575 }
 0x2e8   : > { %v2581_v30 = vpop.permute.xlu1 %2580 }
 0x2ea   : > { %v2373_v13 = vpop.permute.xlu0 %2372 }
 0x2ec   : > { %v2378_v31 = vpop.permute.xlu1 %2377 }
 0x2ee   : > { %v2566_v63 = vpop.permute.xlu0 %2565 }
 0x2f0   : > { %v2571_v46 = vpop.permute.xlu1 %2570 }
 0x2f2   : > { %v2363_v41 = vpop.permute.xlu0 %2362 }
 0x2f4   : > { %v2368_v11 = vpop.permute.xlu1 %2367 }
 0x2f6   : > { %v4936_v9 = vpop.permute.xlu0 %2555 }
 0x2f8   : > { %v4938_v1 = vpop.permute.xlu1 %2560 }
 0x2fa   : > { %v4940_v61 = vpop.permute.xlu0 %2352 }
 0x2fc   : > { %v4942_v28 = vpop.permute.xlu1 %2357 }
 0x2fe   : > { %v4944_v40 = vpop.permute.xlu0 %2545 }
 0x300   : > { %v4946_v38 = vpop.permute.xlu1 %2550 }
 0x302   : > { %v4948_v54 = vpop.permute.xlu0 %2342 }
 0x304   : > { %v4950_v45 = vpop.permute.xlu1 %2347 }
 0x306   : > { %v4952_v59 = vpop.permute.xlu0 %2535 }
 0x308   : > { %v4954_v26 = vpop.permute.xlu1 %2540 }
 0x30a   : > { %v4956_v24 = vpop.permute.xlu0 %2299 }
 0x30c   : > { %v4960_v53 = vpop.permute.xlu1 %2304 }
 0x30d   : > { %v4920_v15 = vpop.f32.mrf.mxu1 }
 0x30e   : > { %v2426_v8 = vmul.f32 %v4920_v15, %v2373_v13  ;;  %v2619_v42 = vmul.f32 %v4920_v15, %v2566_v63  ;;  %v4965_v16 = vpop.permute.xlu0 %2289 }
 0x30f   : > { %v4923_v43 = vpop.f32.mrf.mxu1 }
 0x310   : > { %2464 = vrot.lane.b32.xlu0 %v2426_v8, %s3792_s17  ;;  %v2424_v27 = vmul.f32 %v2363_v41, %v4923_v43  ;;  %v4972_v12 = vpop.permute.xlu1 %2294 }
 0x311   : > { %v3405_v60 = vpop.f32.mrf.mxu1 }
 0x312   : > { %v2427_v37 = vmul.f32 %v3405_v60, %v2378_v31  ;;  %v2620_v18 = vmul.f32 %v3405_v60, %v2571_v46  ;;  %v4976_v44 = vpop.permute.xlu0 %2279 }
 0x313   : > { %v4930_v32 = vpop.f32.mrf.mxu1 }
 0x314   : > { %2657 = vrot.lane.b32.xlu0 %v2619_v42, %s3793_s20  ;;  %2466 = vrot.lane.b32.xlu1 %v2427_v37, %s3792_s17  ;;  %v2425_v52 = vmul.f32 %v2368_v11, %v4930_v32  ;;  %v4984_v3 = vpop.permute.xlu1 %2284 }
 0x316   : > { %v4988_v0 = vpop.permute.xlu0 %2269 }
 0x318   : > { %2460 = vrot.lane.b32.xlu0 %v2424_v27, %s3792_s17  ;;  %2659 = vrot.lane.b32.xlu1 %v2620_v18, %s3793_s20 }
 0x31c   : > { %2462 = vrot.lane.b32.xlu1 %v2425_v52, %s3792_s17 }
 0x35d   : > { %v4958_v34 = vpop.f32.mrf.mxu1 }
 0x35e   : > { %v2430_v51 = vmul.f32 %v4958_v34, %v2393_v21  ;;  %v2623_v2 = vmul.f32 %v4958_v34, %v2586_v10  ;;  %v2260_v10 = vpop.permute.xlu0 %2259 }
 0x35f   : > { %v4963_v6 = vpop.f32.mrf.mxu1  ;;  %v2313_v63 = vmul.f32 %v4920_v15, %v2260_v10  ;;  %v3560_v10 = vld [vmem:[#allocation7] sm:$0xff]  }
 0x360   : > { %2472 = vrot.lane.b32.xlu0 %v2430_v51, %s3792_s17  ;;  %v2428_v33 = vmul.f32 %v2383_v29, %v4963_v6  ;;  %v2621_v20 = vmul.f32 %v2576_v48, %v4963_v6  ;;  %3430 = vmatprep.mubr.bf16.mxu1 %v3560_v10 }
 0x361   : > { %v4968_v19 = vpop.f32.mrf.mxu1 }
 0x362   : > { %v2431_v4 = vmul.f32 %v4968_v19, %v2398_v36  ;;  %v2624_v39 = vmul.f32 %v4968_v19, %v2591_v55  ;;  %v4993_v36 = vpop.permute.xlu1 %2274  ;;  %v4996_v29 = vpop.permute.xlu0 %2249 }
 0x363   : > { %v4980_v17 = vpop.f32.mrf.mxu1 }
 0x364   : > { %2665 = vrot.lane.b32.xlu0 %v2623_v2, %s3793_s20  ;;  %2474 = vrot.lane.b32.xlu1 %v2431_v4, %s3792_s17  ;;  %v2429_v58 = vmul.f32 %v2388_v5, %v4980_v17  ;;  %v2622_v21 = vmul.f32 %v2581_v30, %v4980_v17 }
 0x366   : > { %v2265_v55 = vpop.permute.xlu1 %2264  ;;  %v5000_v48 = vpop.permute.xlu0 %2239 }
 0x367   : > { %v2314_v42 = vmul.f32 %v3405_v60, %v2265_v55 }
 0x368   : > { %2468 = vrot.lane.b32.xlu0 %v2428_v33, %s3792_s17  ;;  %2667 = vrot.lane.b32.xlu1 %v2624_v39, %s3793_s20 }
 0x36a   : > { %v4998_v13 = vpop.permute.xlu1 %2254 }
 0x36c   : > { %2661 = vrot.lane.b32.xlu0 %v2621_v20, %s3793_s20  ;;  %2470 = vrot.lane.b32.xlu1 %v2429_v58, %s3792_s17  ;;  %v2212_v20 = vld [vmem:[#allocation6 + $0x8] sm:$0xff]  ;;  %v2617_v58 = vmul.f32 %v4936_v9, %v4923_v43  ;;  %v2616_v9 = vmul.f32 %v4916_v7, %v4946_v38  ;;  %v2614_v38 = vmul.f32 %v4954_v26, %v4918_v49  ;;  %v2743_v26 = vld [vmem:[%s5276_s7 + $0x50] sm:$0xff] }
 0x36e   : > { %v5002_v5 = vpop.permute.xlu1 %2244 }
 0x370   : > { %2663 = vrot.lane.b32.xlu1 %v2622_v21, %s3793_s20  ;;  %v2615_v21 = vmul.f32 %v4912_v25, %v4944_v40  ;;  %v2747_v40 = vld [vmem:[%s5276_s7 + $0x70] sm:$0xff] }
 0x382   : > { %v2465_v31 = vpop.permute.xlu0 %2464 }
 0x383   : > { %v2506_v37 = vadd.f32 %v2465_v31, %v2313_v63 }
 0x386   : > { %v2467_v8 = vpop.permute.xlu1 %2466  ;;  %v2658_v30 = vpop.permute.xlu0 %2657 }
 0x387   : > { %v2507_v46 = vadd.f32 %v2467_v8, %v2314_v42  ;;  %v2699_v27 = vadd.f32 %v2658_v30, %v2506_v37  ;;  %v2746_v8 = vld [vmem:[%s5276_s7 + $0x68] sm:$0xff]  ;;  %v2317_v42 = vmul.f32 %v4958_v34, %v4976_v44  ;;  %v2318_v30 = vmul.f32 %v4968_v19, %v4984_v3  ;;  %v2739_v19 = vld [vmem:[%s5276_s7 + $0x30] sm:$0xff]  ;;  %v2737_v3 = vld [vmem:[%s5276_s7 + $0x20] sm:$0xff] }
 0x388   : > { %v2742_v44 = vld [vmem:[%s5276_s7 + $0x48] sm:$0xff] }
 0x38a   : > { %v2660_v41 = vpop.permute.xlu1 %2659 }
 0x38b   : > { %v2700_v18 = vadd.f32 %v2660_v41, %v2507_v46 }
 0x38d   : > { %v5005_v11 = vpack.c.bf16 %v2700_v18, %v2699_v27  ;;  %v2741_v27 = vld [vmem:[%s5276_s7 + $0x40] sm:$0xff]  ;;  %v2744_v18 = vld [vmem:[%s5276_s7 + $0x58] sm:$0xff] }
 0x38e   : > { %v5080_v55 = vpop.permute.xlu1 %2462 }
 0x3a5   : > { %v5007_v52 = vpop.f32.mrf.mxu1 }
 0x3a6   : > { %v2434_v51 = vmul.f32 %v5007_v52, %v4896_v14  ;;  %v2627_v15 = vmul.f32 %v5007_v52, %v4900_v23 }
 0x3a7   : > { %v5011_v2 = vpop.f32.mrf.mxu1 }
 0x3a8   : > { %2480 = vrot.lane.b32.xlu0 %v2434_v51, %s3792_s17  ;;  %v2432_v33 = vmul.f32 %v4904_v35, %v5011_v2  ;;  %v2625_v23 = vmul.f32 %v4908_v56, %v5011_v2  ;;  %v2211_v35 = vld [vmem:[#allocation6] sm:$0xff]  ;;  %v2618_v56 = vmul.f32 %v4938_v1, %v4930_v32  ;;  %v2420_v1 = vmul.f32 %v4948_v54, %v4914_v62  ;;  %v5071_v54 = vpop.permute.xlu0 %2460 }
 0x3a9   : > { %v5014_v4 = vpop.f32.mrf.mxu1 }
 0x3aa   : > { %v2435_v60 = vmul.f32 %v5014_v4, %v4898_v50  ;;  %v2628_v14 = vmul.f32 %v5014_v4, %v4902_v57 }
 0x3ab   : > { %v5026_v39 = vpop.f32.mrf.mxu1 }
 0x3ac   : > { %2673 = vrot.lane.b32.xlu0 %v2627_v15, %s3793_s20  ;;  %2482 = vrot.lane.b32.xlu1 %v2435_v60, %s3792_s17  ;;  %v2433_v50 = vmul.f32 %v4906_v47, %v5026_v39  ;;  %v2626_v57 = vmul.f32 %v4910_v22, %v5026_v39  ;;  %v2422_v47 = vmul.f32 %v4912_v25, %v4940_v61 }
 0x3ad   : > { %v2423_v22 = vmul.f32 %v4916_v7, %v4942_v28  ;;  %v2421_v61 = vmul.f32 %v4950_v45, %v4918_v49  ;;  %v2613_v28 = vmul.f32 %v4952_v59, %v4914_v62  ;;  %v2745_v45 = vld [vmem:[%s5276_s7 + $0x60] sm:$0xff]  ;;  %v2748_v59 = vld [vmem:[%s5276_s7 + $0x78] sm:$0xff] }
 0x3b0   : > { %2476 = vrot.lane.b32.xlu0 %v2432_v33, %s3792_s17  ;;  %2675 = vrot.lane.b32.xlu1 %v2628_v14, %s3793_s20  ;;  %v2740_v33 = vld [vmem:[%s5276_s7 + $0x38] sm:$0xff]  ;;  %v2735_v14 = vld [vmem:[%s5276_s7 + $0x10] sm:$0xff] }
 0x3b4   : > { %2669 = vrot.lane.b32.xlu0 %v2625_v23, %s3793_s20  ;;  %2478 = vrot.lane.b32.xlu1 %v2433_v50, %s3792_s17  ;;  %v2738_v23 = vld [vmem:[%s5276_s7 + $0x28] sm:$0xff]  ;;  %v2733_v50 = vld [vmem:[%s5276_s7] sm:$0xff] }
 0x3b8   : > { %2229 = vperm.xlu0 %3536, %v2211_v35   ;;  %2671 = vrot.lane.b32.xlu1 %v2626_v57, %s3793_s20  ;;  %v2736_v35 = vld [vmem:[%s5276_s7 + $0x18] sm:$0xff]  ;;  %v2734_v57 = vld [vmem:[%s5276_s7 + $0x8] sm:$0xff] }
 0x3bc   : > { %2653 = vrot.lane.b32.xlu0 %v2617_v58, %s3793_s20  ;;  %2234 = vperm.xlu1 %3537, %v2212_v20  }
 0x3c0   : > { %2456 = vrot.lane.b32.xlu0 %v2422_v47, %s3792_s17  ;;  %2655 = vrot.lane.b32.xlu1 %v2618_v56, %s3793_s20 }
 0x3c4   : > { %2649 = vrot.lane.b32.xlu0 %v2615_v21, %s3793_s20  ;;  %2458 = vrot.lane.b32.xlu1 %v2423_v22, %s3792_s17 }
 0x3c8   : > { %2452 = vrot.lane.b32.xlu0 %v2420_v1, %s3792_s17  ;;  %2651 = vrot.lane.b32.xlu1 %v2616_v9, %s3793_s20  ;;  %v2321_v1 = vmul.f32 %v5007_v52, %v4956_v24 }
 0x3cc   : > { %2645 = vrot.lane.b32.xlu0 %v2613_v28, %s3793_s20  ;;  %2454 = vrot.lane.b32.xlu1 %v2421_v61, %s3792_s17  ;;  %v2322_v61 = vmul.f32 %v5014_v4, %v4960_v53  ;;  %v2316_v4 = vmul.f32 %v4993_v36, %v4980_v17  ;;  %v2311_v17 = vmul.f32 %v4996_v29, %v4923_v43 }
 0x3cd   : > { %v2309_v43 = vmul.f32 %v4912_v25, %v5000_v48 }
 0x3d0   : > { %2821 = vperm.xlu0 %3536, %v2747_v40   ;;  %2647 = vrot.lane.b32.xlu1 %v2614_v38, %s3793_s20 }
 0x3d2   : > { %v2473_v31 = vpop.permute.xlu0 %2472 }
 0x3d3   : > { %v2510_v46 = vadd.f32 %v2473_v31, %v2317_v42 }
 0x3d4   : > { %2811 = vperm.xlu0 %3536, %v2745_v45   ;;  %2826 = vperm.xlu1 %3537, %v2748_v59  }
 0x3d6   : > { %v2475_v63 = vpop.permute.xlu1 %2474  ;;  %v2666_v37 = vpop.permute.xlu0 %2665 }
 0x3d7   : > { %v2511_v41 = vadd.f32 %v2475_v63, %v2318_v30  ;;  %v2703_v15 = vadd.f32 %v2666_v37, %v2510_v46  ;;  %v2320_v63 = vmul.f32 %v4972_v12, %v5026_v39  ;;  %v2315_v46 = vmul.f32 %v4988_v0, %v4963_v6 }
 0x3d8   : > { %2801 = vperm.xlu0 %3536, %v2743_v26   ;;  %2816 = vperm.xlu1 %3537, %v2746_v8   ;;  %v2319_v8 = vmul.f32 %v4965_v16, %v5011_v2  ;;  %v2312_v6 = vmul.f32 %v4998_v13, %v4930_v32  ;;  %v2504_v0 = vadd.f32 %v5071_v54, %v2311_v17 }
 0x3d9   : > { %v2310_v32 = vmul.f32 %v4916_v7, %v5002_v5 }
 0x3da   : > { %v2668_v51 = vpop.permute.xlu1 %2667  ;;  %v2469_v20 = vpop.permute.xlu0 %2468  ;;  %v2505_v36 = vadd.f32 %v5080_v55, %v2312_v6 }
 0x3db   : > { %v2704_v60 = vadd.f32 %v2668_v51, %v2511_v41  ;;  %v2508_v16 = vadd.f32 %v2469_v20, %v2315_v46 }
 0x3dc   : > { %2791 = vperm.xlu0 %3536, %v2741_v27   ;;  %2806 = vperm.xlu1 %3537, %v2744_v18  }
 0x3dd   : > { %v2730_v34 = vpack.c.bf16 %v2704_v60, %v2703_v15 }
 0x3de   : > { %v2471_v58 = vpop.permute.xlu1 %2470  ;;  %v2662_v47 = vpop.permute.xlu0 %2661 }
 0x3df   : > { %v2509_v41 = vadd.f32 %v2471_v58, %v2316_v4  ;;  %v2701_v12 = vadd.f32 %v2662_v47, %v2508_v16 }
 0x3e0   : > { %2781 = vperm.xlu0 %3536, %v2739_v19   ;;  %2796 = vperm.xlu1 %3537, %v2742_v44  }
 0x3e2   : > { %v2664_v56 = vpop.permute.xlu1 %2663 }
 0x3e3   : > { %v2702_v2 = vadd.f32 %v2664_v56, %v2509_v41 }
 0x3e4   : > { %2771 = vperm.xlu0 %3536, %v2737_v3   ;;  %2786 = vperm.xlu1 %3537, %v2740_v33  }
 0x3e5   : > { %v2729_v39 = vpack.c.bf16 %v2702_v2, %v2701_v12 }
 0x3e8   : > { %2761 = vperm.xlu0 %3536, %v2735_v14   ;;  %2776 = vperm.xlu1 %3537, %v2738_v23  }
 0x3ec   : > { %2751 = vperm.xlu0 %3536, %v2733_v50   ;;  %2766 = vperm.xlu1 %3537, %v2736_v35  }
 0x3f0   : > { %2756 = vperm.xlu1 %3537, %v2734_v57  }
 0x41a   : > { %v2481_v22 = vpop.permute.xlu0 %2480 }
 0x41b   : > { %v2514_v28 = vadd.f32 %v2481_v22, %v2321_v1  ;;  %v3561_v22 = vld [vmem:[#allocation7 + $0x8] sm:$0xff]   ;;  %v3564_v1 = vld [vmem:[#allocation7 + $0x20] sm:$0xff]  }
 0x41e   : > { %v2674_v21 = vpop.permute.xlu0 %2673  ;;  %v2483_v9 = vpop.permute.xlu1 %2482 }
 0x41f   : > { %v2515_v40 = vadd.f32 %v2483_v9, %v2322_v61  ;;  %v2707_v59 = vadd.f32 %v2674_v21, %v2514_v28  ;;  %v3562_v21 = vld [vmem:[#allocation7 + $0x10] sm:$0xff]   ;;  %v3563_v9 = vld [vmem:[#allocation7 + $0x18] sm:$0xff]   ;;  %v3796_v28 = vmov 0.0  }
 0x420   : > { %v3567_v61 = vld [vmem:[#allocation7 + $0x38] sm:$0xff]   ;;  %3446 = vmatprep.subr.bf16.mxu0 %v3796_v28  ;;  %3462 = vmatprep.mubr.msk.bf16.mxu0 %vm3797_vm6, %v3796_v28 }
 0x422   : > { %v2477_v38 = vpop.permute.xlu0 %2476  ;;  %v2676_v45 = vpop.permute.xlu1 %2675 }
 0x423   : > { %v2708_v10 = vadd.f32 %v2676_v45, %v2515_v40  ;;  %v2512_v24 = vadd.f32 %v2477_v38, %v2319_v8 }
 0x425   : > { %v2732_v31 = vpack.c.bf16 %v2708_v10, %v2707_v59 }
 0x426   : > { %v2479_v26 = vpop.permute.xlu1 %2478  ;;  %v2670_v42 = vpop.permute.xlu0 %2669 }
 0x427   : > { %3414 = vmatprep.subr.bf16.mxu1 %v2732_v31  ;;  %v2513_v52 = vadd.f32 %v2479_v26, %v2320_v63  ;;  %v2705_v30 = vadd.f32 %v2670_v42, %v2512_v24 }
 0x428   : > { %3415 = vmatpush3.bf16.msra.mxu1 %v2732_v31 }
 0x42a   : > { %v2672_v53 = vpop.permute.xlu1 %2671 }
 0x42b   : > { %v2706_v37 = vadd.f32 %v2672_v53, %v2513_v52 }
 0x42d   : > { %v2731_v27 = vpack.c.bf16 %v2706_v37, %v2705_v30 }
 0x42f   : > { %3416 = vmatprep.subr.bf16.mxu1 %v2731_v27 }
 0x430   : > { %3417 = vmatpush3.bf16.msra.mxu1 %v2731_v27 }
 0x431   : > { %3418 = vmatprep.subr.bf16.mxu1 %v2730_v34 }
 0x433   : > { %v2230_v18 = vpop.permute.xlu0 %2229 }
 0x434   : > { %3419 = vmatpush3.bf16.msra.mxu1 %v2730_v34 }
 0x435   : > { %3420 = vmatprep.subr.bf16.mxu1 %v2729_v39 }
 0x437   : > { %v2654_v51 = vpop.permute.xlu0 %2653  ;;  %v2235_v15 = vpop.permute.xlu1 %2234 }
 0x438   : > { %3421 = vmatpush3.bf16.msra.mxu1 %v2729_v39  ;;  %v2697_v44 = vadd.f32 %v2654_v51, %v2504_v0  ;;  %v2308_v20 = vmul.f32 %v2235_v15, %v4918_v49  ;;  %v3566_v49 = vld [vmem:[#allocation7 + $0x30] sm:$0xff]  }
 0x439   : > { %3422 = vmatprep.subr.bf16.mxu1 %v5005_v11 }
 0x43b   : > { %v2457_v60 = vpop.permute.xlu0 %2456  ;;  %v2656_v19 = vpop.permute.xlu1 %2655 }
 0x43c   : > { %v2698_v34 = vadd.f32 %v2656_v19, %v2505_v36  ;;  %3423 = vmatpush3.bf16.msra.mxu1 %v5005_v11  ;;  %v2502_v29 = vadd.f32 %v2457_v60, %v2309_v43  ;;  %v2307_v11 = vmul.f32 %v2230_v18, %v4914_v62  ;;  %v3565_v62 = vld [vmem:[#allocation7 + $0x28] sm:$0xff]  }
 0x43e   : > { %v2727_v3 = vpack.c.bf16 %v2698_v34, %v2697_v44 }
 0x43f   : > { %v2650_v33 = vpop.permute.xlu0 %2649  ;;  %v2459_v14 = vpop.permute.xlu1 %2458 }
 0x440   : > { %3424 = vmatprep.subr.bf16.mxu1 %v2727_v3  ;;  %v2503_v13 = vadd.f32 %v2459_v14, %v2310_v32  ;;  %v2695_v23 = vadd.f32 %v2650_v33, %v2502_v29 }
 0x441   : > { %3425 = vmatpush3.bf16.msra.mxu1 %v2727_v3 }
 0x443   : > { %v2453_v54 = vpop.permute.xlu0 %2452  ;;  %v2652_v55 = vpop.permute.xlu1 %2651 }
 0x444   : > { %v2696_v50 = vadd.f32 %v2652_v55, %v2503_v13  ;;  %v2500_v25 = vadd.f32 %v2453_v54, %v2307_v11 }
 0x446   : > { %v2726_v35 = vpack.c.bf16 %v2696_v50, %v2695_v23 }
 0x447   : > { %v2455_v57 = vpop.permute.xlu1 %2454  ;;  %v2646_v58 = vpop.permute.xlu0 %2645 }
 0x448   : > { %3426 = vmatprep.subr.bf16.mxu1 %v2726_v35  ;;  %v2501_v48 = vadd.f32 %v2455_v57, %v2308_v20  ;;  %v2693_v5 = vadd.f32 %v2646_v58, %v2500_v25 }
 0x449   : > { %3427 = vmatpush3.bf16.msra.mxu1 %v2726_v35 }
 0x44b   : > { %v2648_v7 = vpop.permute.xlu1 %2647  ;;  %v2822_v40 = vpop.permute.xlu0 %2821 }
 0x44c   : > { %v2694_v47 = vadd.f32 %v2648_v7, %v2501_v48 }
 0x44e   : > { %v2725_v56 = vpack.c.bf16 %v2694_v47, %v2693_v5 }
 0x44f   : > { %v5152_v38 = vpop.permute.xlu1 %2826  ;;  %v2812_v45 = vpop.permute.xlu0 %2811 }
 0x450   : > { %3428 = vmatprep.subr.bf16.mxu1 %v2725_v56 }
 0x451   : > { %3429 = vmatpush3.bf16.msra.mxu1 %v2725_v56 }
 0x453   : > { %v5154_v59 = vpop.permute.xlu1 %2816  ;;  %v5156_v10 = vpop.permute.xlu0 %2801 }
 0x454   : > { %3431 = vmatmul.mubr.bf16.vlgmr.msra.gmra.mxu1 %v3561_v22 }
 0x455   : > { %3434 = vmatprep.mubr.bf16.mxu1 %v3562_v21 }
 0x457   : > { %v5158_v31 = vpop.permute.xlu1 %2806  ;;  %v5160_v26 = vpop.permute.xlu0 %2791 }
 0x45b   : > { %v5162_v8 = vpop.permute.xlu1 %2796  ;;  %v5164_v63 = vpop.permute.xlu0 %2781 }
 0x45c   : > { %3435 = vmatmul.mubr.bf16.gmra.mxu1 %v3563_v9 }
 0x45d   : > { %3438 = vmatprep.mubr.bf16.mxu1 %v3564_v1 }
 0x45f   : > { %v5167_v42 = vpop.permute.xlu1 %2786  ;;  %v5169_v24 = vpop.permute.xlu0 %2771 }
 0x463   : > { %v5171_v52 = vpop.permute.xlu1 %2776  ;;  %v2762_v53 = vpop.permute.xlu0 %2761 }
 0x464   : > { %3439 = vmatmul.mubr.bf16.gmra.mxu1 %v3565_v62 }
 0x465   : > { %3442 = vmatprep.mubr.bf16.mxu1 %v3566_v49 }
 0x467   : > { %v2767_v30 = vpop.permute.xlu1 %2766  ;;  %v2752_v46 = vpop.permute.xlu0 %2751 }
 0x46b   : > { %v2757_v15 = vpop.permute.xlu1 %2756 }
 0x46c   : > { %3443 = vmatmul.mubr.bf16.gmra.mxu1 %v3567_v61 }
 0x514   : > { %v3432_v4 = vpop.f32.mrf.mxu1 }
 0x515   : > { %v2920_v37 = vadd.f32 %v3432_v4, %v2762_v53 }
 0x516   : > { %v2911_v41 = vpop.f32.mrf.mxu1 }
 0x517   : > { %v2992_v27 = vmin.f32 %v2920_v37, 0.0  ;;  %v2912_v16 = vadd.f32 %v2911_v41, %v2752_v46  ;;  %vm2976_vm7 = vcmp.gt.f32.partialorder %v2920_v37, 0.0 }
 0x518   : > { %v3433_v2 = vpop.f32.mrf.mxu1 }
 0x519   : > { %v3010_v12 = vmul.f32 1.442695, %v2992_v27  ;;  %v2990_v39 = vmin.f32 %v2912_v16, 0.0  ;;  %v2923_v18 = vadd.f32 %v3433_v2, %v2767_v30  ;;  %vm2974_vm10 = vcmp.gt.f32.partialorder %v2912_v16, 0.0 }
 0x51a   : > { %v2914_v51 = vpop.f32.mrf.mxu1 }
 0x51b   : > { %3600 = vpow2.f32 %v3010_v12  ;;  %v3006_v17 = vmul.f32 1.442695, %v2990_v39  ;;  %v2993_v6 = vmin.f32 %v2923_v18, 0.0  ;;  %v2915_v0 = vadd.f32 %v2914_v51, %v2757_v15 }
 0x51c   : > { %v5173_v36 = vpop.f32.mrf.mxu1  ;;  %vm2977_vm8 = vcmp.gt.f32.partialorder %v2923_v18, 0.0 }
 0x51d   : > { %v3012_v60 = vmul.f32 1.442695, %v2993_v6  ;;  %3602 = vpow2.f32 %v3006_v17  ;;  %v2991_v19 = vmin.f32 %v2915_v0, 0.0  ;;  %vm2975_vm9 = vcmp.gt.f32.partialorder %v2915_v0, 0.0 }
 0x51e   : > { %v5175_v44 = vpop.f32.mrf.mxu1 }
 0x51f   : > { %3604 = vpow2.f32 %v3012_v60  ;;  %v3008_v34 = vmul.f32 1.442695, %v2991_v19 }
 0x520   : > { %v3437_v3 = vpop.f32.mrf.mxu1 }
 0x521   : > { %3606 = vpow2.f32 %v3008_v34  ;;  %v5213_v51 = vadd.f32 %v3437_v3, %v5167_v42 }
 0x522   : > { %v5177_v33 = vpop.f32.mrf.mxu1 }
 0x523   : > { %v2997_v34 = vmin.f32 %v5213_v51, 0.0  ;;  %vm2981_vm3 = vcmp.gt.f32.partialorder %v5213_v51, 0.0 }
 0x524   : > { %v3440_v14 = vpop.f32.mrf.mxu1 }
 0x526   : > { %v2943_v43 = vpop.f32.mrf.mxu1 }
 0x527   : > { %v5208_v12 = vadd.f32 %v2943_v43, %v5160_v26 }
 0x528   : > { %v3601_v32 = vpop.eup %3600  ;;  %v3441_v29 = vpop.f32.mrf.mxu1 }
 0x529   : > { %v3323_v13 = vadd.f32 -1.0, %v3601_v32  ;;  %vm2982_vm2 = vcmp.gt.f32.partialorder %v5208_v12, 0.0 }
 0x52a   : > { %v2946_v54 = vpop.f32.mrf.mxu1  ;;  %v3603_v55 = vpop.eup %3602 }
 0x52b   : > { %v5179_v11 = vsel %vm2976_vm7, %v2920_v37, %v3323_v13  ;;  %v3321_v25 = vadd.f32 -1.0, %v3603_v55  ;;  %v5200_v37 = vadd.f32 %v3440_v14, %v5156_v10  ;;  %v2931_v13 = vadd.f32 %v5177_v33, %v5171_v52 }
 0x52c   : > { %v3605_v23 = vpop.eup %3604  ;;  %v3444_v50 = vpop.f32.mrf.mxu1 }
 0x52d   : > { %v3324_v35 = vadd.f32 -1.0, %v3605_v23  ;;  %v2968_v57 = vadd.f32 %v3444_v50, %v2822_v40  ;;  %v5191_v61 = vsel %vm2974_vm10, %v2912_v16, %v3321_v25  ;;  %v5194_v40 = vadd.f32 %v3441_v29, %v5158_v31 }
 0x52e   : > { %v2959_v20 = vpop.f32.mrf.mxu1  ;;  %v3607_v58 = vpop.eup %3606  ;;  %v3000_v31 = vmin.f32 %v5200_v37, 0.0  ;;  %v2928_v50 = vadd.f32 %v5175_v44, %v5169_v24  ;;  %vm2984_vm5 = vcmp.gt.f32.partialorder %v5200_v37, 0.0  ;;  %vm2979_vm6 = vcmp.gt.f32.partialorder %v2931_v13, 0.0 }
 0x52f   : > { %v5181_v48 = vsel %vm2977_vm8, %v2923_v18, %v3324_v35  ;;  %v3004_v7 = vmin.f32 %v2968_v57, 0.0  ;;  %v5183_v5 = vadd.f32 %v2959_v20, %v2812_v45  ;;  %v3322_v47 = vadd.f32 -1.0, %v3607_v58 }
 0x530   : > { %v3445_v56 = vpop.f32.mrf.mxu1  ;;  %v3072_v22 = vpack.c.bf16 %v5181_v48, %v5179_v11  ;;  %v3026_v2 = vmul.f32 1.442695, %v3000_v31  ;;  %v2998_v18 = vmin.f32 %v5208_v12, 0.0  ;;  %vm2988_vm11 = vcmp.gt.f32.partialorder %v2968_v57, 0.0 }
 0x531   : > { %v3034_v21 = vmul.f32 1.442695, %v3004_v7  ;;  %v3002_v9 = vmin.f32 %v5183_v5, 0.0  ;;  %v5188_v1 = vsel %vm2975_vm9, %v2915_v0, %v3322_v47  ;;  %v2971_v62 = vadd.f32 %v3445_v56, %v5152_v38 }
 0x532   : > { %v2962_v49 = vpop.f32.mrf.mxu1  ;;  %v3071_v4 = vpack.c.bf16 %v5188_v1, %v5191_v61  ;;  %v3001_v38 = vmin.f32 %v5194_v40, 0.0  ;;  %v3022_v26 = vmul.f32 1.442695, %v2998_v18  ;;  %vm2986_vm14 = vcmp.gt.f32.partialorder %v5183_v5, 0.0 }
 0x533   : > { %3608 = vpow2.f32 %v3034_v21  ;;  %v3005_v45 = vmin.f32 %v2971_v62, 0.0  ;;  %v2963_v53 = vadd.f32 %v2962_v49, %v5154_v59  ;;  %v3030_v30 = vmul.f32 1.442695, %v3002_v9 }
 0x534   : > { %v3028_v16 = vmul.f32 1.442695, %v3001_v38  ;;  %v5205_v59 = vadd.f32 %v2946_v54, %v5162_v8  ;;  %v5217_v8 = vadd.f32 %v5173_v36, %v5164_v63  ;;  %vm2989_vm12 = vcmp.gt.f32.partialorder %v2971_v62, 0.0 }
 0x535   : > { %v3036_v46 = vmul.f32 1.442695, %v3005_v45  ;;  %v3003_v41 = vmin.f32 %v2963_v53, 0.0  ;;  %vm2987_vm13 = vcmp.gt.f32.partialorder %v2963_v53, 0.0  ;;  %v3020_v36 = vmul.f32 1.442695, %v2997_v34 }
 0x536   : > { %v2999_v10 = vmin.f32 %v5205_v59, 0.0  ;;  %v2996_v32 = vmin.f32 %v5217_v8, 0.0  ;;  %v2995_v58 = vmin.f32 %v2931_v13, 0.0  ;;  %v2994_v52 = vmin.f32 %v2928_v50, 0.0 }
 0x537   : > { %3610 = vpow2.f32 %v3036_v46  ;;  %v3032_v27 = vmul.f32 1.442695, %v3003_v41  ;;  %vm2985_vm15 = vcmp.gt.f32.partialorder %v5194_v40, 0.0  ;;  %vm2983_vm1 = vcmp.gt.f32.partialorder %v5205_v59, 0.0 }
 0x538   : > { %3612 = vpow2.f32 %v3030_v30  ;;  %v3024_v15 = vmul.f32 1.442695, %v2999_v10  ;;  %v3018_v23 = vmul.f32 1.442695, %v2996_v32  ;;  %v3016_v47 = vmul.f32 1.442695, %v2995_v58 }
 0x539   : > { %3614 = vpow2.f32 %v3032_v27  ;;  %v3014_v24 = vmul.f32 1.442695, %v2994_v52  ;;  %vm2980_vm4 = vcmp.gt.f32.partialorder %v5217_v8, 0.0  ;;  %vm2978_vm7 = vcmp.gt.f32.partialorder %v2928_v50, 0.0 }
 0x53a   : > { %3616 = vpow2.f32 %v3028_v16 }
 0x53b   : > { %3618 = vpow2.f32 %v3026_v2 }
 0x53c   : > { %3620 = vpow2.f32 %v3024_v15 }
 0x53d   : > { %3622 = vpow2.f32 %v3022_v26  ;;  %v3070_v26 = vld [vmem:[#allocation9] sm:$0xf] }
 0x53e   : > { %3624 = vpow2.f32 %v3020_v36 }
 0x53f   : > { %3626 = vpow2.f32 %v3018_v23 }
 0x540   : > { %v3609_v39 = vpop.eup %3608  ;;  %3628 = vpow2.f32 %v3016_v47 }
 0x541   : > { %v3335_v17 = vadd.f32 -1.0, %v3609_v39  ;;  %3630 = vpow2.f32 %v3014_v24 }
 0x543   : > { %v3068_v14 = vsel %vm2988_vm11, %v2968_v57, %v3335_v17 }
 0x544   : > { %v3611_v6 = vpop.eup %3610 }
 0x545   : > { %v3613_v0 = vpop.eup %3612  ;;  %v3336_v60 = vadd.f32 -1.0, %v3611_v6 }
 0x546   : > { %v3615_v19 = vpop.eup %3614  ;;  %v3333_v29 = vadd.f32 -1.0, %v3613_v0  ;;  %v3086_v0 = vsel %vm488_vm0, %v3072_v22, 0 }
 0x547   : > { %v3069_v43 = vsel %vm2989_vm12, %v2971_v62, %v3336_v60  ;;  %v3334_v42 = vadd.f32 -1.0, %v3615_v19  ;;  %v3617_v55 = vpop.eup %3616 }
 0x548   : > { %v3078_v3 = vpack.c.bf16 %v3069_v43, %v3068_v14  ;;  %v3066_v35 = vsel %vm2986_vm14, %v5183_v5, %v3333_v29  ;;  %v3619_v57 = vpop.eup %3618  ;;  %v3332_v25 = vadd.f32 -1.0, %v3617_v55 }
 0x549   : > { %v3067_v54 = vsel %vm2987_vm13, %v2963_v53, %v3334_v42  ;;  %v3331_v33 = vadd.f32 -1.0, %v3619_v57  ;;  %v3621_v21 = vpop.eup %3620 }
 0x54a   : > { %v3104_v63 = vsel %vm488_vm0, %v3078_v3, 0  ;;  %v3077_v20 = vpack.c.bf16 %v3067_v54, %v3066_v35  ;;  %v3065_v56 = vsel %vm2985_vm15, %v5194_v40, %v3332_v25  ;;  %v3623_v5 = vpop.eup %3622  ;;  %v3330_v62 = vadd.f32 -1.0, %v3621_v21 }
 0x54b   : > { %3447 = vmatpush3.bf16.xpose.msra.mxu0 %v3104_v63  ;;  %v3064_v44 = vsel %vm2984_vm5, %v5200_v37, %v3331_v33  ;;  %v3329_v49 = vadd.f32 -1.0, %v3623_v5  ;;  %v3625_v53 = vpop.eup %3624 }
 0x54c   : > { %3448 = vmatprep.subr.bf16.mxu0 %v3796_v28  ;;  %v3101_v7 = vsel %vm488_vm0, %v3077_v20, 0  ;;  %v3076_v9 = vpack.c.bf16 %v3065_v56, %v3064_v44  ;;  %v3063_v40 = vsel %vm2983_vm1, %v5205_v59, %v3330_v62  ;;  %v3627_v37 = vpop.eup %3626  ;;  %v3328_v41 = vadd.f32 -1.0, %v3625_v53 }
 0x54d   : > { %v3062_v30 = vsel %vm2982_vm2, %v5208_v12, %v3329_v49  ;;  %v3327_v38 = vadd.f32 -1.0, %v3627_v37  ;;  %v3629_v16 = vpop.eup %3628 }
 0x54e   : > { %v3098_v45 = vsel %vm488_vm0, %v3076_v9, 0  ;;  %v3075_v46 = vpack.c.bf16 %v3063_v40, %v3062_v30  ;;  %v3061_v31 = vsel %vm2981_vm3, %v5213_v51, %v3328_v41  ;;  %v3631_v2 = vpop.eup %3630  ;;  %v3326_v10 = vadd.f32 -1.0, %v3629_v16 }
 0x54f   : > { %v3060_v59 = vsel %vm2980_vm4, %v5217_v8, %v3327_v38  ;;  %v3325_v39 = vadd.f32 -1.0, %v3631_v2  ;;  %v3083_v8 = vsel %vm488_vm0, %v3071_v4, 0 }
 0x550   : > { %v3095_v27 = vsel %vm488_vm0, %v3075_v46, 0  ;;  %v3074_v12 = vpack.c.bf16 %v3061_v31, %v3060_v59  ;;  %v3059_v15 = vsel %vm2979_vm6, %v2931_v13, %v3326_v10 }
 0x551   : > { %v3058_v51 = vsel %vm2978_vm7, %v2928_v50, %v3325_v39 }
 0x552   : > { %v3092_v18 = vsel %vm488_vm0, %v3074_v12, 0  ;;  %v3073_v17 = vpack.c.bf16 %v3059_v15, %v3058_v51 }
 0x553   : > { %3449 = vmatpush3.bf16.xpose.msra.mxu0 %v3101_v7 }
 0x554   : > { %3450 = vmatprep.subr.bf16.mxu0 %v3796_v28  ;;  %v3089_v6 = vsel %vm488_vm0, %v3073_v17, 0 }
 0x55b   : > { %3451 = vmatpush3.bf16.xpose.msra.mxu0 %v3098_v45 }
 0x55c   : > { %3452 = vmatprep.subr.bf16.mxu0 %v3796_v28 }
 0x563   : > { %3453 = vmatpush3.bf16.xpose.msra.mxu0 %v3095_v27 }
 0x564   : > { %3454 = vmatprep.subr.bf16.mxu0 %v3796_v28 }
 0x56b   : > { %3455 = vmatpush3.bf16.xpose.msra.mxu0 %v3092_v18 }
 0x56c   : > { %3456 = vmatprep.subr.bf16.mxu0 %v3796_v28 }
 0x573   : > { %3457 = vmatpush3.bf16.xpose.msra.mxu0 %v3089_v6 }
 0x574   : > { %3458 = vmatprep.subr.bf16.mxu0 %v3796_v28 }
 0x57b   : > { %3459 = vmatpush3.bf16.xpose.msra.mxu0 %v3086_v0 }
 0x57c   : > { %3460 = vmatprep.subr.bf16.mxu0 %v3796_v28 }
 0x583   : > { %3461 = vmatpush3.bf16.xpose.msra.mxu0 %v3083_v8 }
 0x58a   : > { %3463 = vmatmul.mubr.msk.bf16.vlgmr.msra.gmra.mxu0 %vm488_vm0, %v3070_v26 }
 0x64a   : > { %v3140_v11 = vpop.f32.mrf.mxu0 }
 0x64b   : > { %3146 = vst [vmem:[%s406_s16] sm:$0xff] %v3140_v11 }
 0x64c   : > { %v3464_v48 = vpop.f32.mrf.mxu0 }
 0x64e   : > { %v3143_v28 = vpop.f32.mrf.mxu0 }
 0x650   : > { %v3465_v22 = vpop.f32.mrf.mxu0 }
 0x651 PF: > { %s22_s30 = sadd.s32 1, %s3780_s30  }
 0x652   : > { %p19_p1 = scmp.ge.s32.totalorder %s22_s30, 4  }
 0x654   :  { %21 = sbr.rel (!%p19_p1) target bundleno = 3 (0x3), region = 113 }
 0x659   :  { %3166 = vsyncpa [#allocation3], 1 }
 0x65a   :  { %3168 = vsyncpa [#allocation3 + $0x1], 1 }
 0x65b   :  { %3169 = vsyncpa [#allocation5], 1 }
 0x65c   :  { %3170 = vsyncpa [#allocation8], 1 }

</bundles_post_ra>
